<compile_context>
chip_gen: v7x
topology: tpu7x:2x2x1
jax: 0.10.0
libtpu: 0.0.40
codegen_flags: <defaults>
</compile_context>

<pallas_src>
import math

import jax
import jax.numpy as jnp
from jax.experimental import pallas as pl
from jax.experimental.pallas import tpu as pltpu


def _pick_strip_rows(H, cap=32):
    """Strip height: full H for small images, else largest divisor <= cap."""
    if H <= cap:
        return H
    for th in range(cap, 7, -1):
        if H % th == 0:
            return th
    # Prime-ish H: one whole-image strip beats a TH=1 pathology.
    return H


def _make_dwconv_kernel(H, W, C, TH):
    def kernel(x_ref, w_ref, b_ref, o_ref):
        # x_ref: (1, H, W, C)  full unpadded image, VMEM-resident across strips
        # w_ref: (3, 3, C)     depthwise filter taps
        # b_ref: (1, 1, C)     bias
        # o_ref: (1, TH, W, C) output row-strip
        t = pl.program_id(1)
        h0 = t * TH

        w = w_ref[...].astype(jnp.float32)            # (3, 3, C), tiny
        bias = b_ref[0, 0, :].astype(jnp.float32)     # (C,)

        # Sublane-index masks that zero the column wrapped around by the roll
        # (emulates the zero padding at w = -1 and w = W).
        col = jax.lax.broadcasted_iota(jnp.int32, (W, 1), 0)
        not_first = (col > 0).astype(jnp.float32)     # kills wrapped col 0
        not_last = (col < W - 1).astype(jnp.float32)  # kills wrapped col W-1

        def load_row(hh, maybe_oob):
            # hh: dynamic image-row index -> (W, C) f32, zeroed if out of range.
            if maybe_oob:
                idx = jnp.clip(hh, 0, H - 1)
            else:
                idx = hh
            row = x_ref[0, pl.ds(idx, 1), :, :].reshape(W, C).astype(jnp.float32)
            if maybe_oob:
                valid = jnp.logical_and(hh >= 0, hh < H).astype(jnp.float32)
                row = row * valid
            return row

        def taps(row, krow):
            # Three W-taps of one input row.  pltpu.roll uses the XLU slot
            # (idle otherwise in this kernel), so the shifts are nearly free.
            left = pltpu.roll(row, shift=1, axis=0) * not_first       # x[w-1]
            right = pltpu.roll(row, shift=W - 1, axis=0) * not_last   # x[w+1]
            return left * krow[0] + row * krow[1] + right * krow[2]

        # Per-output-row fused 9-tap accumulation: every operand stays at row
        # (vreg-scale) granularity and the output is stored exactly once.
        # Only r == 0 / r == TH-1 can touch rows outside the image, so the
        # clamp+mask is applied only there.
        for r in range(TH):
            h = h0 + r
            acc = (bias
                   + taps(load_row(h - 1, r == 0), w[0])
                   + taps(load_row(h, False), w[1])
                   + taps(load_row(h + 1, r == TH - 1), w[2]))
            o_ref[0, r, :, :] = acc.astype(o_ref.dtype)

    return kernel


def dwconv_forward(x, weight, bias):
    """DWConv forward pass.

    x:      (B, N, C)
    weight: (C, 1, 3, 3)   PyTorch depthwise Conv2d weight layout
    bias:   (C,)
    returns (B, N, C)
    """
    B, N, C = x.shape
    H = math.isqrt(N)
    W = H
    assert H * W == N, "N must be a perfect square"
    TH = _pick_strip_rows(H)
    n_strips = H // TH if H % TH == 0 else 1
    if TH == H:
        n_strips = 1

    x_nhwc = x.reshape(B, H, W, C)                           # free reshape, NO pad
    w_hwc = jnp.transpose(weight[:, 0, :, :], (1, 2, 0))     # (3, 3, C), tiny
    bias3 = bias.reshape(1, 1, C)

    # Scoped-VMEM budget from the actual (double-buffered) block sizes.
    itemsize = jnp.dtype(x.dtype).itemsize
    in_block = H * W * C * itemsize
    out_block = TH * W * C * itemsize
    need = 2 * in_block + 2 * out_block + (1 << 20)
    vmem_limit = int(min(max(need, 32 << 20), 100 << 20))
    # TODO(synk): for very large feature maps on v7x (64 MiB VMEM/TC), tile the
    # channel axis instead of keeping the whole image resident.

    kernel = _make_dwconv_kernel(H, W, C, TH)
    out = pl.pallas_call(
        kernel,
        out_shape=jax.ShapeDtypeStruct((B, H, W, C), x.dtype),
        grid_spec=pltpu.PrefetchScalarGridSpec(
            num_scalar_prefetch=0,
            grid=(B, n_strips),
            in_specs=[
                # Full unpadded image: index_map ignores the strip axis, so the
                # block is DMA'd once per batch element and stays resident.
                pl.BlockSpec((1, H, W, C), lambda b, t: (b, 0, 0, 0)),
                pl.BlockSpec((3, 3, C), lambda b, t: (0, 0, 0)),
                pl.BlockSpec((1, 1, C), lambda b, t: (0, 0, 0)),
            ],
            out_specs=pl.BlockSpec((1, TH, W, C), lambda b, t: (b, t, 0, 0)),
        ),
        compiler_params=pltpu.CompilerParams(
            # Strip axis is "arbitrary": it reuses the same input block, so any
            # dual-TC (v7x) split should land on the batch axis instead.
            dimension_semantics=("parallel", "arbitrary"),
            vmem_limit_bytes=vmem_limit,
        ),
    )(x_nhwc, w_hwc, bias3)

    return out.reshape(B, N, C)


def dwconv_reference(x, weight, bias):
    """Pure-JAX reference: depthwise 3x3 conv, stride 1, padding 1."""
    B, N, C = x.shape
    H = math.isqrt(N)
    x_nhwc = x.reshape(B, H, H, C)
    w = jnp.transpose(weight[:, 0, :, :], (1, 2, 0)).reshape(3, 3, 1, C)  # HWIO
    y = jax.lax.conv_general_dilated(
        x_nhwc, w, window_strides=(1, 1), padding="SAME",
        dimension_numbers=("NHWC", "HWIO", "NHWC"),
        feature_group_count=C)
    y = y + bias.reshape(1, 1, 1, C)
    return y.reshape(B, N, C)


if __name__ == "__main__":
    # DWConv(dim=64): x is (B, N, C) with C == dim and N a perfect square.
    # Configs exercise single-strip small images (H=8, 16) and a multi-strip
    # image (H=64 -> TH=32, two strips) to cover both the image-edge and the
    # strip-boundary halo paths.
    key = jax.random.PRNGKey(0)
    for (B, Hs, C) in [(2, 8, 64), (2, 16, 64), (1, 64, 64)]:
        N = Hs * Hs
        kx, kw, kb, key = jax.random.split(key, 4)
        x = jax.random.normal(kx, (B, N, C), dtype=jnp.float32)
        weight = jax.random.normal(kw, (C, 1, 3, 3), dtype=jnp.float32) * 0.1
        bias = jax.random.normal(kb, (C,), dtype=jnp.float32) * 0.1

        y = jax.block_until_ready(dwconv_forward(x, weight, bias))
        y_ref = dwconv_reference(x, weight, bias)

        assert y.shape == (B, N, C)
        assert jnp.allclose(y, y_ref, atol=1e-4, rtol=1e-4), f"mismatch at H={Hs}"

    print("KERNEL_OK")
</pallas_src>

<mosaic_0001>
module attributes {stable_mosaic.version = 11 : i64} {
  func.func @kernel(%arg0: i32, %arg1: i32, %arg2: memref<1x8x8x64xf32, #tpu.memory_space<vmem>>, %arg3: memref<3x3x64xf32, #tpu.memory_space<vmem>>, %arg4: memref<1x1x64xf32, #tpu.memory_space<vmem>>, %arg5: memref<1x8x8x64xf32, #tpu.memory_space<vmem>>) attributes {dimension_semantics = [#tpu.dimension_semantics<parallel>, #tpu.dimension_semantics<arbitrary>], iteration_bounds = array<i64: 2, 1>, scalar_prefetch = 0 : i64, scratch_operands = 0 : i64, tpu.core_type = #tpu.core_type<tc>, window_params = [{transform_indices = @transform_0, window_bounds = array<i64: 1, 8, 8, 64>}, {pipeline_mode = #tpu.pipeline_mode<synchronous>, transform_indices = @transform_1, window_bounds = array<i64: 3, 3, 64>}, {pipeline_mode = #tpu.pipeline_mode<synchronous>, transform_indices = @transform_2, window_bounds = array<i64: 1, 1, 64>}, {transform_indices = @transform_3, window_bounds = array<i64: 1, 8, 8, 64>}]} {
    %c8_i32 = arith.constant 8 : i32
    %0 = arith.muli %arg1, %c8_i32 : i32
    %c0 = arith.constant 0 : index
    %c0_0 = arith.constant 0 : index
    %c0_1 = arith.constant 0 : index
    %1 = vector.load %arg3[%c0, %c0_0, %c0_1] : memref<3x3x64xf32, #tpu.memory_space<vmem>>, vector<3x3x64xf32>
    %c0_2 = arith.constant 0 : index
    %c0_3 = arith.constant 0 : index
    %c0_4 = arith.constant 0 : index
    %2 = vector.load %arg4[%c0_2, %c0_3, %c0_4] : memref<1x1x64xf32, #tpu.memory_space<vmem>>, vector<1x1x64xf32>
    %3 = vector.shape_cast %2 : vector<1x1x64xf32> to vector<64xf32>
    %4 = tpu.iota {dimensions = array<i32: 0>} : vector<8x1xi32>
    %c0_i32 = arith.constant 0 : i32
    %5 = vector.broadcast %c0_i32 : i32 to vector<8x1xi32>
    %6 = arith.cmpi sgt, %4, %5 : vector<8x1xi32>
    %7 = arith.extui %6 : vector<8x1xi1> to vector<8x1xi32>
    %8 = arith.sitofp %7 : vector<8x1xi32> to vector<8x1xf32>
    %c7_i32 = arith.constant 7 : i32
    %9 = vector.broadcast %c7_i32 : i32 to vector<8x1xi32>
    %10 = arith.cmpi slt, %4, %9 : vector<8x1xi32>
    %11 = arith.extui %10 : vector<8x1xi1> to vector<8x1xi32>
    %12 = arith.sitofp %11 : vector<8x1xi32> to vector<8x1xf32>
    %c0_i32_5 = arith.constant 0 : i32
    %13 = arith.addi %0, %c0_i32_5 : i32
    %c1_i32 = arith.constant 1 : i32
    %14 = arith.subi %13, %c1_i32 : i32
    %c0_i32_6 = arith.constant 0 : i32
    %c7_i32_7 = arith.constant 7 : i32
    %15 = arith.maxsi %c0_i32_6, %14 : i32
    %16 = arith.minsi %c7_i32_7, %15 : i32
    %c0_8 = arith.constant 0 : index
    %17 = arith.index_cast %16 : i32 to index
    %c0_9 = arith.constant 0 : index
    %c0_10 = arith.constant 0 : index
    %18 = vector.load %arg2[%c0_8, %17, %c0_9, %c0_10] : memref<1x8x8x64xf32, #tpu.memory_space<vmem>>, vector<1x1x8x64xf32>
    %19 = vector.shape_cast %18 : vector<1x1x8x64xf32> to vector<1x8x64xf32>
    %20 = vector.shape_cast %19 : vector<1x8x64xf32> to vector<8x64xf32>
    %c0_i32_11 = arith.constant 0 : i32
    %21 = arith.cmpi sge, %14, %c0_i32_11 : i32
    %c8_i32_12 = arith.constant 8 : i32
    %22 = arith.cmpi slt, %14, %c8_i32_12 : i32
    %23 = arith.andi %21, %22 : i1
    %24 = arith.extui %23 : i1 to i32
    %25 = arith.sitofp %24 : i32 to f32
    %26 = vector.broadcast %25 : f32 to vector<8x64xf32>
    %27 = arith.mulf %20, %26 : vector<8x64xf32>
    %28 = vector.extract_strided_slice %1 {offsets = [0, 0, 0], sizes = [1, 3, 64], strides = [1, 1, 1]} : vector<3x3x64xf32> to vector<1x3x64xf32>
    %29 = vector.shape_cast %28 : vector<1x3x64xf32> to vector<3x64xf32>
    %c1_i32_13 = arith.constant 1 : i32
    %30 = tpu.dynamic_rotate %27 by %c1_i32_13 dim 0 : vector<8x64xf32>, i32 -> vector<8x64xf32>
    %31 = vector.broadcast %8 : vector<8x1xf32> to vector<8x64xf32>
    %32 = arith.mulf %30, %31 : vector<8x64xf32>
    %c7_i32_14 = arith.constant 7 : i32
    %33 = tpu.dynamic_rotate %27 by %c7_i32_14 dim 0 : vector<8x64xf32>, i32 -> vector<8x64xf32>
    %34 = vector.broadcast %12 : vector<8x1xf32> to vector<8x64xf32>
    %35 = arith.mulf %33, %34 : vector<8x64xf32>
    %36 = vector.extract_strided_slice %29 {offsets = [0, 0], sizes = [1, 64], strides = [1, 1]} : vector<3x64xf32> to vector<1x64xf32>
    %37 = vector.shape_cast %36 : vector<1x64xf32> to vector<64xf32>
    %38 = vector.shape_cast %37 : vector<64xf32> to vector<1x64xf32>
    %39 = vector.broadcast %38 : vector<1x64xf32> to vector<8x64xf32>
    %40 = arith.mulf %32, %39 : vector<8x64xf32>
    %41 = vector.extract_strided_slice %29 {offsets = [1, 0], sizes = [1, 64], strides = [1, 1]} : vector<3x64xf32> to vector<1x64xf32>
    %42 = vector.shape_cast %41 : vector<1x64xf32> to vector<64xf32>
    %43 = vector.shape_cast %42 : vector<64xf32> to vector<1x64xf32>
    %44 = vector.broadcast %43 : vector<1x64xf32> to vector<8x64xf32>
    %45 = arith.mulf %27, %44 : vector<8x64xf32>
    %46 = arith.addf %40, %45 : vector<8x64xf32>
    %47 = vector.extract_strided_slice %29 {offsets = [2, 0], sizes = [1, 64], strides = [1, 1]} : vector<3x64xf32> to vector<1x64xf32>
    %48 = vector.shape_cast %47 : vector<1x64xf32> to vector<64xf32>
    %49 = vector.shape_cast %48 : vector<64xf32> to vector<1x64xf32>
    %50 = vector.broadcast %49 : vector<1x64xf32> to vector<8x64xf32>
    %51 = arith.mulf %35, %50 : vector<8x64xf32>
    %52 = arith.addf %46, %51 : vector<8x64xf32>
    %53 = vector.shape_cast %3 : vector<64xf32> to vector<1x64xf32>
    %54 = vector.broadcast %53 : vector<1x64xf32> to vector<8x64xf32>
    %55 = arith.addf %54, %52 : vector<8x64xf32>
    %c0_15 = arith.constant 0 : index
    %56 = arith.index_cast %13 : i32 to index
    %c0_16 = arith.constant 0 : index
    %c0_17 = arith.constant 0 : index
    %57 = vector.load %arg2[%c0_15, %56, %c0_16, %c0_17] : memref<1x8x8x64xf32, #tpu.memory_space<vmem>>, vector<1x1x8x64xf32>
    %58 = vector.shape_cast %57 : vector<1x1x8x64xf32> to vector<1x8x64xf32>
    %59 = vector.shape_cast %58 : vector<1x8x64xf32> to vector<8x64xf32>
    %60 = vector.extract_strided_slice %1 {offsets = [1, 0, 0], sizes = [1, 3, 64], strides = [1, 1, 1]} : vector<3x3x64xf32> to vector<1x3x64xf32>
    %61 = vector.shape_cast %60 : vector<1x3x64xf32> to vector<3x64xf32>
    %c1_i32_18 = arith.constant 1 : i32
    %62 = tpu.dynamic_rotate %59 by %c1_i32_18 dim 0 : vector<8x64xf32>, i32 -> vector<8x64xf32>
    %63 = vector.broadcast %8 : vector<8x1xf32> to vector<8x64xf32>
    %64 = arith.mulf %62, %63 : vector<8x64xf32>
    %c7_i32_19 = arith.constant 7 : i32
    %65 = tpu.dynamic_rotate %59 by %c7_i32_19 dim 0 : vector<8x64xf32>, i32 -> vector<8x64xf32>
    %66 = vector.broadcast %12 : vector<8x1xf32> to vector<8x64xf32>
    %67 = arith.mulf %65, %66 : vector<8x64xf32>
    %68 = vector.extract_strided_slice %61 {offsets = [0, 0], sizes = [1, 64], strides = [1, 1]} : vector<3x64xf32> to vector<1x64xf32>
    %69 = vector.shape_cast %68 : vector<1x64xf32> to vector<64xf32>
    %70 = vector.shape_cast %69 : vector<64xf32> to vector<1x64xf32>
    %71 = vector.broadcast %70 : vector<1x64xf32> to vector<8x64xf32>
    %72 = arith.mulf %64, %71 : vector<8x64xf32>
    %73 = vector.extract_strided_slice %61 {offsets = [1, 0], sizes = [1, 64], strides = [1, 1]} : vector<3x64xf32> to vector<1x64xf32>
    %74 = vector.shape_cast %73 : vector<1x64xf32> to vector<64xf32>
    %75 = vector.shape_cast %74 : vector<64xf32> to vector<1x64xf32>
    %76 = vector.broadcast %75 : vector<1x64xf32> to vector<8x64xf32>
    %77 = arith.mulf %59, %76 : vector<8x64xf32>
    %78 = arith.addf %72, %77 : vector<8x64xf32>
    %79 = vector.extract_strided_slice %61 {offsets = [2, 0], sizes = [1, 64], strides = [1, 1]} : vector<3x64xf32> to vector<1x64xf32>
    %80 = vector.shape_cast %79 : vector<1x64xf32> to vector<64xf32>
    %81 = vector.shape_cast %80 : vector<64xf32> to vector<1x64xf32>
    %82 = vector.broadcast %81 : vector<1x64xf32> to vector<8x64xf32>
    %83 = arith.mulf %67, %82 : vector<8x64xf32>
    %84 = arith.addf %78, %83 : vector<8x64xf32>
    %85 = arith.addf %55, %84 : vector<8x64xf32>
    %c1_i32_20 = arith.constant 1 : i32
    %86 = arith.addi %13, %c1_i32_20 : i32
    %c0_21 = arith.constant 0 : index
    %87 = arith.index_cast %86 : i32 to index
    %c0_22 = arith.constant 0 : index
    %c0_23 = arith.constant 0 : index
    %88 = vector.load %arg2[%c0_21, %87, %c0_22, %c0_23] : memref<1x8x8x64xf32, #tpu.memory_space<vmem>>, vector<1x1x8x64xf32>
    %89 = vector.shape_cast %88 : vector<1x1x8x64xf32> to vector<1x8x64xf32>
    %90 = vector.shape_cast %89 : vector<1x8x64xf32> to vector<8x64xf32>
    %91 = vector.extract_strided_slice %1 {offsets = [2, 0, 0], sizes = [1, 3, 64], strides = [1, 1, 1]} : vector<3x3x64xf32> to vector<1x3x64xf32>
    %92 = vector.shape_cast %91 : vector<1x3x64xf32> to vector<3x64xf32>
    %c1_i32_24 = arith.constant 1 : i32
    %93 = tpu.dynamic_rotate %90 by %c1_i32_24 dim 0 : vector<8x64xf32>, i32 -> vector<8x64xf32>
    %94 = vector.broadcast %8 : vector<8x1xf32> to vector<8x64xf32>
    %95 = arith.mulf %93, %94 : vector<8x64xf32>
    %c7_i32_25 = arith.constant 7 : i32
    %96 = tpu.dynamic_rotate %90 by %c7_i32_25 dim 0 : vector<8x64xf32>, i32 -> vector<8x64xf32>
    %97 = vector.broadcast %12 : vector<8x1xf32> to vector<8x64xf32>
    %98 = arith.mulf %96, %97 : vector<8x64xf32>
    %99 = vector.extract_strided_slice %92 {offsets = [0, 0], sizes = [1, 64], strides = [1, 1]} : vector<3x64xf32> to vector<1x64xf32>
    %100 = vector.shape_cast %99 : vector<1x64xf32> to vector<64xf32>
    %101 = vector.shape_cast %100 : vector<64xf32> to vector<1x64xf32>
    %102 = vector.broadcast %101 : vector<1x64xf32> to vector<8x64xf32>
    %103 = arith.mulf %95, %102 : vector<8x64xf32>
    %104 = vector.extract_strided_slice %92 {offsets = [1, 0], sizes = [1, 64], strides = [1, 1]} : vector<3x64xf32> to vector<1x64xf32>
    %105 = vector.shape_cast %104 : vector<1x64xf32> to vector<64xf32>
    %106 = vector.shape_cast %105 : vector<64xf32> to vector<1x64xf32>
    %107 = vector.broadcast %106 : vector<1x64xf32> to vector<8x64xf32>
    %108 = arith.mulf %90, %107 : vector<8x64xf32>
    %109 = arith.addf %103, %108 : vector<8x64xf32>
    %110 = vector.extract_strided_slice %92 {offsets = [2, 0], sizes = [1, 64], strides = [1, 1]} : vector<3x64xf32> to vector<1x64xf32>
    %111 = vector.shape_cast %110 : vector<1x64xf32> to vector<64xf32>
    %112 = vector.shape_cast %111 : vector<64xf32> to vector<1x64xf32>
    %113 = vector.broadcast %112 : vector<1x64xf32> to vector<8x64xf32>
    %114 = arith.mulf %98, %113 : vector<8x64xf32>
    %115 = arith.addf %109, %114 : vector<8x64xf32>
    %116 = arith.addf %85, %115 : vector<8x64xf32>
    %c0_26 = arith.constant 0 : index
    %c0_27 = arith.constant 0 : index
    %c0_28 = arith.constant 0 : index
    %c0_29 = arith.constant 0 : index
    %117 = vector.load %arg5[%c0_26, %c0_27, %c0_28, %c0_29] : memref<1x8x8x64xf32, #tpu.memory_space<vmem>>, vector<1x1x8x64xf32>
    %118 = vector.shape_cast %117 : vector<1x1x8x64xf32> to vector<8x64xf32>
    %119 = vector.shape_cast %116 : vector<8x64xf32> to vector<1x1x8x64xf32>
    tpu.vector_store %arg5[%c0_26, %c0_27, %c0_28, %c0_29], %119 {strides = array<i32>} : memref<1x8x8x64xf32, #tpu.memory_space<vmem>>, vector<1x1x8x64xf32>,
    %c1_i32_30 = arith.constant 1 : i32
    %120 = arith.addi %0, %c1_i32_30 : i32
    %c1_i32_31 = arith.constant 1 : i32
    %121 = arith.subi %120, %c1_i32_31 : i32
    %c0_32 = arith.constant 0 : index
    %122 = arith.index_cast %121 : i32 to index
    %c0_33 = arith.constant 0 : index
    %c0_34 = arith.constant 0 : index
    %123 = vector.load %arg2[%c0_32, %122, %c0_33, %c0_34] : memref<1x8x8x64xf32, #tpu.memory_space<vmem>>, vector<1x1x8x64xf32>
    %124 = vector.shape_cast %123 : vector<1x1x8x64xf32> to vector<1x8x64xf32>
    %125 = vector.shape_cast %124 : vector<1x8x64xf32> to vector<8x64xf32>
    %126 = vector.extract_strided_slice %1 {offsets = [0, 0, 0], sizes = [1, 3, 64], strides = [1, 1, 1]} : vector<3x3x64xf32> to vector<1x3x64xf32>
    %127 = vector.shape_cast %126 : vector<1x3x64xf32> to vector<3x64xf32>
    %c1_i32_35 = arith.constant 1 : i32
    %128 = tpu.dynamic_rotate %125 by %c1_i32_35 dim 0 : vector<8x64xf32>, i32 -> vector<8x64xf32>
    %129 = vector.broadcast %8 : vector<8x1xf32> to vector<8x64xf32>
    %130 = arith.mulf %128, %129 : vector<8x64xf32>
    %c7_i32_36 = arith.constant 7 : i32
    %131 = tpu.dynamic_rotate %125 by %c7_i32_36 dim 0 : vector<8x64xf32>, i32 -> vector<8x64xf32>
    %132 = vector.broadcast %12 : vector<8x1xf32> to vector<8x64xf32>
    %133 = arith.mulf %131, %132 : vector<8x64xf32>
    %134 = vector.extract_strided_slice %127 {offsets = [0, 0], sizes = [1, 64], strides = [1, 1]} : vector<3x64xf32> to vector<1x64xf32>
    %135 = vector.shape_cast %134 : vector<1x64xf32> to vector<64xf32>
    %136 = vector.shape_cast %135 : vector<64xf32> to vector<1x64xf32>
    %137 = vector.broadcast %136 : vector<1x64xf32> to vector<8x64xf32>
    %138 = arith.mulf %130, %137 : vector<8x64xf32>
    %139 = vector.extract_strided_slice %127 {offsets = [1, 0], sizes = [1, 64], strides = [1, 1]} : vector<3x64xf32> to vector<1x64xf32>
    %140 = vector.shape_cast %139 : vector<1x64xf32> to vector<64xf32>
    %141 = vector.shape_cast %140 : vector<64xf32> to vector<1x64xf32>
    %142 = vector.broadcast %141 : vector<1x64xf32> to vector<8x64xf32>
    %143 = arith.mulf %125, %142 : vector<8x64xf32>
    %144 = arith.addf %138, %143 : vector<8x64xf32>
    %145 = vector.extract_strided_slice %127 {offsets = [2, 0], sizes = [1, 64], strides = [1, 1]} : vector<3x64xf32> to vector<1x64xf32>
    %146 = vector.shape_cast %145 : vector<1x64xf32> to vector<64xf32>
    %147 = vector.shape_cast %146 : vector<64xf32> to vector<1x64xf32>
    %148 = vector.broadcast %147 : vector<1x64xf32> to vector<8x64xf32>
    %149 = arith.mulf %133, %148 : vector<8x64xf32>
    %150 = arith.addf %144, %149 : vector<8x64xf32>
    %151 = vector.shape_cast %3 : vector<64xf32> to vector<1x64xf32>
    %152 = vector.broadcast %151 : vector<1x64xf32> to vector<8x64xf32>
    %153 = arith.addf %152, %150 : vector<8x64xf32>
    %c0_37 = arith.constant 0 : index
    %154 = arith.index_cast %120 : i32 to index
    %c0_38 = arith.constant 0 : index
    %c0_39 = arith.constant 0 : index
    %155 = vector.load %arg2[%c0_37, %154, %c0_38, %c0_39] : memref<1x8x8x64xf32, #tpu.memory_space<vmem>>, vector<1x1x8x64xf32>
    %156 = vector.shape_cast %155 : vector<1x1x8x64xf32> to vector<1x8x64xf32>
    %157 = vector.shape_cast %156 : vector<1x8x64xf32> to vector<8x64xf32>
    %158 = vector.extract_strided_slice %1 {offsets = [1, 0, 0], sizes = [1, 3, 64], strides = [1, 1, 1]} : vector<3x3x64xf32> to vector<1x3x64xf32>
    %159 = vector.shape_cast %158 : vector<1x3x64xf32> to vector<3x64xf32>
    %c1_i32_40 = arith.constant 1 : i32
    %160 = tpu.dynamic_rotate %157 by %c1_i32_40 dim 0 : vector<8x64xf32>, i32 -> vector<8x64xf32>
    %161 = vector.broadcast %8 : vector<8x1xf32> to vector<8x64xf32>
    %162 = arith.mulf %160, %161 : vector<8x64xf32>
    %c7_i32_41 = arith.constant 7 : i32
    %163 = tpu.dynamic_rotate %157 by %c7_i32_41 dim 0 : vector<8x64xf32>, i32 -> vector<8x64xf32>
    %164 = vector.broadcast %12 : vector<8x1xf32> to vector<8x64xf32>
    %165 = arith.mulf %163, %164 : vector<8x64xf32>
    %166 = vector.extract_strided_slice %159 {offsets = [0, 0], sizes = [1, 64], strides = [1, 1]} : vector<3x64xf32> to vector<1x64xf32>
    %167 = vector.shape_cast %166 : vector<1x64xf32> to vector<64xf32>
    %168 = vector.shape_cast %167 : vector<64xf32> to vector<1x64xf32>
    %169 = vector.broadcast %168 : vector<1x64xf32> to vector<8x64xf32>
    %170 = arith.mulf %162, %169 : vector<8x64xf32>
    %171 = vector.extract_strided_slice %159 {offsets = [1, 0], sizes = [1, 64], strides = [1, 1]} : vector<3x64xf32> to vector<1x64xf32>
    %172 = vector.shape_cast %171 : vector<1x64xf32> to vector<64xf32>
    %173 = vector.shape_cast %172 : vector<64xf32> to vector<1x64xf32>
    %174 = vector.broadcast %173 : vector<1x64xf32> to vector<8x64xf32>
    %175 = arith.mulf %157, %174 : vector<8x64xf32>
    %176 = arith.addf %170, %175 : vector<8x64xf32>
    %177 = vector.extract_strided_slice %159 {offsets = [2, 0], sizes = [1, 64], strides = [1, 1]} : vector<3x64xf32> to vector<1x64xf32>
    %178 = vector.shape_cast %177 : vector<1x64xf32> to vector<64xf32>
    %179 = vector.shape_cast %178 : vector<64xf32> to vector<1x64xf32>
    %180 = vector.broadcast %179 : vector<1x64xf32> to vector<8x64xf32>
    %181 = arith.mulf %165, %180 : vector<8x64xf32>
    %182 = arith.addf %176, %181 : vector<8x64xf32>
    %183 = arith.addf %153, %182 : vector<8x64xf32>
    %c1_i32_42 = arith.constant 1 : i32
    %184 = arith.addi %120, %c1_i32_42 : i32
    %c0_43 = arith.constant 0 : index
    %185 = arith.index_cast %184 : i32 to index
    %c0_44 = arith.constant 0 : index
    %c0_45 = arith.constant 0 : index
    %186 = vector.load %arg2[%c0_43, %185, %c0_44, %c0_45] : memref<1x8x8x64xf32, #tpu.memory_space<vmem>>, vector<1x1x8x64xf32>
    %187 = vector.shape_cast %186 : vector<1x1x8x64xf32> to vector<1x8x64xf32>
    %188 = vector.shape_cast %187 : vector<1x8x64xf32> to vector<8x64xf32>
    %189 = vector.extract_strided_slice %1 {offsets = [2, 0, 0], sizes = [1, 3, 64], strides = [1, 1, 1]} : vector<3x3x64xf32> to vector<1x3x64xf32>
    %190 = vector.shape_cast %189 : vector<1x3x64xf32> to vector<3x64xf32>
    %c1_i32_46 = arith.constant 1 : i32
    %191 = tpu.dynamic_rotate %188 by %c1_i32_46 dim 0 : vector<8x64xf32>, i32 -> vector<8x64xf32>
    %192 = vector.broadcast %8 : vector<8x1xf32> to vector<8x64xf32>
    %193 = arith.mulf %191, %192 : vector<8x64xf32>
    %c7_i32_47 = arith.constant 7 : i32
    %194 = tpu.dynamic_rotate %188 by %c7_i32_47 dim 0 : vector<8x64xf32>, i32 -> vector<8x64xf32>
    %195 = vector.broadcast %12 : vector<8x1xf32> to vector<8x64xf32>
    %196 = arith.mulf %194, %195 : vector<8x64xf32>
    %197 = vector.extract_strided_slice %190 {offsets = [0, 0], sizes = [1, 64], strides = [1, 1]} : vector<3x64xf32> to vector<1x64xf32>
    %198 = vector.shape_cast %197 : vector<1x64xf32> to vector<64xf32>
    %199 = vector.shape_cast %198 : vector<64xf32> to vector<1x64xf32>
    %200 = vector.broadcast %199 : vector<1x64xf32> to vector<8x64xf32>
    %201 = arith.mulf %193, %200 : vector<8x64xf32>
    %202 = vector.extract_strided_slice %190 {offsets = [1, 0], sizes = [1, 64], strides = [1, 1]} : vector<3x64xf32> to vector<1x64xf32>
    %203 = vector.shape_cast %202 : vector<1x64xf32> to vector<64xf32>
    %204 = vector.shape_cast %203 : vector<64xf32> to vector<1x64xf32>
    %205 = vector.broadcast %204 : vector<1x64xf32> to vector<8x64xf32>
    %206 = arith.mulf %188, %205 : vector<8x64xf32>
    %207 = arith.addf %201, %206 : vector<8x64xf32>
    %208 = vector.extract_strided_slice %190 {offsets = [2, 0], sizes = [1, 64], strides = [1, 1]} : vector<3x64xf32> to vector<1x64xf32>
    %209 = vector.shape_cast %208 : vector<1x64xf32> to vector<64xf32>
    %210 = vector.shape_cast %209 : vector<64xf32> to vector<1x64xf32>
    %211 = vector.broadcast %210 : vector<1x64xf32> to vector<8x64xf32>
    %212 = arith.mulf %196, %211 : vector<8x64xf32>
    %213 = arith.addf %207, %212 : vector<8x64xf32>
    %214 = arith.addf %183, %213 : vector<8x64xf32>
    %c0_48 = arith.constant 0 : index
    %c1 = arith.constant 1 : index
    %c0_49 = arith.constant 0 : index
    %c0_50 = arith.constant 0 : index
    %215 = vector.load %arg5[%c0_48, %c1, %c0_49, %c0_50] : memref<1x8x8x64xf32, #tpu.memory_space<vmem>>, vector<1x1x8x64xf32>
    %216 = vector.shape_cast %215 : vector<1x1x8x64xf32> to vector<8x64xf32>
    %217 = vector.shape_cast %214 : vector<8x64xf32> to vector<1x1x8x64xf32>
    tpu.vector_store %arg5[%c0_48, %c1, %c0_49, %c0_50], %217 {strides = array<i32>} : memref<1x8x8x64xf32, #tpu.memory_space<vmem>>, vector<1x1x8x64xf32>,
    %c2_i32 = arith.constant 2 : i32
    %218 = arith.addi %0, %c2_i32 : i32
    %c1_i32_51 = arith.constant 1 : i32
    %219 = arith.subi %218, %c1_i32_51 : i32
    %c0_52 = arith.constant 0 : index
    %220 = arith.index_cast %219 : i32 to index
    %c0_53 = arith.constant 0 : index
    %c0_54 = arith.constant 0 : index
    %221 = vector.load %arg2[%c0_52, %220, %c0_53, %c0_54] : memref<1x8x8x64xf32, #tpu.memory_space<vmem>>, vector<1x1x8x64xf32>
    %222 = vector.shape_cast %221 : vector<1x1x8x64xf32> to vector<1x8x64xf32>
    %223 = vector.shape_cast %222 : vector<1x8x64xf32> to vector<8x64xf32>
    %224 = vector.extract_strided_slice %1 {offsets = [0, 0, 0], sizes = [1, 3, 64], strides = [1, 1, 1]} : vector<3x3x64xf32> to vector<1x3x64xf32>
    %225 = vector.shape_cast %224 : vector<1x3x64xf32> to vector<3x64xf32>
    %c1_i32_55 = arith.constant 1 : i32
    %226 = tpu.dynamic_rotate %223 by %c1_i32_55 dim 0 : vector<8x64xf32>, i32 -> vector<8x64xf32>
    %227 = vector.broadcast %8 : vector<8x1xf32> to vector<8x64xf32>
    %228 = arith.mulf %226, %227 : vector<8x64xf32>
    %c7_i32_56 = arith.constant 7 : i32
    %229 = tpu.dynamic_rotate %223 by %c7_i32_56 dim 0 : vector<8x64xf32>, i32 -> vector<8x64xf32>
    %230 = vector.broadcast %12 : vector<8x1xf32> to vector<8x64xf32>
    %231 = arith.mulf %229, %230 : vector<8x64xf32>
    %232 = vector.extract_strided_slice %225 {offsets = [0, 0], sizes = [1, 64], strides = [1, 1]} : vector<3x64xf32> to vector<1x64xf32>
    %233 = vector.shape_cast %232 : vector<1x64xf32> to vector<64xf32>
    %234 = vector.shape_cast %233 : vector<64xf32> to vector<1x64xf32>
    %235 = vector.broadcast %234 : vector<1x64xf32> to vector<8x64xf32>
    %236 = arith.mulf %228, %235 : vector<8x64xf32>
    %237 = vector.extract_strided_slice %225 {offsets = [1, 0], sizes = [1, 64], strides = [1, 1]} : vector<3x64xf32> to vector<1x64xf32>
    %238 = vector.shape_cast %237 : vector<1x64xf32> to vector<64xf32>
    %239 = vector.shape_cast %238 : vector<64xf32> to vector<1x64xf32>
    %240 = vector.broadcast %239 : vector<1x64xf32> to vector<8x64xf32>
    %241 = arith.mulf %223, %240 : vector<8x64xf32>
    %242 = arith.addf %236, %241 : vector<8x64xf32>
    %243 = vector.extract_strided_slice %225 {offsets = [2, 0], sizes = [1, 64], strides = [1, 1]} : vector<3x64xf32> to vector<1x64xf32>
    %244 = vector.shape_cast %243 : vector<1x64xf32> to vector<64xf32>
    %245 = vector.shape_cast %244 : vector<64xf32> to vector<1x64xf32>
    %246 = vector.broadcast %245 : vector<1x64xf32> to vector<8x64xf32>
    %247 = arith.mulf %231, %246 : vector<8x64xf32>
    %248 = arith.addf %242, %247 : vector<8x64xf32>
    %249 = vector.shape_cast %3 : vector<64xf32> to vector<1x64xf32>
    %250 = vector.broadcast %249 : vector<1x64xf32> to vector<8x64xf32>
    %251 = arith.addf %250, %248 : vector<8x64xf32>
    %c0_57 = arith.constant 0 : index
    %252 = arith.index_cast %218 : i32 to index
    %c0_58 = arith.constant 0 : index
    %c0_59 = arith.constant 0 : index
    %253 = vector.load %arg2[%c0_57, %252, %c0_58, %c0_59] : memref<1x8x8x64xf32, #tpu.memory_space<vmem>>, vector<1x1x8x64xf32>
    %254 = vector.shape_cast %253 : vector<1x1x8x64xf32> to vector<1x8x64xf32>
    %255 = vector.shape_cast %254 : vector<1x8x64xf32> to vector<8x64xf32>
    %256 = vector.extract_strided_slice %1 {offsets = [1, 0, 0], sizes = [1, 3, 64], strides = [1, 1, 1]} : vector<3x3x64xf32> to vector<1x3x64xf32>
    %257 = vector.shape_cast %256 : vector<1x3x64xf32> to vector<3x64xf32>
    %c1_i32_60 = arith.constant 1 : i32
    %258 = tpu.dynamic_rotate %255 by %c1_i32_60 dim 0 : vector<8x64xf32>, i32 -> vector<8x64xf32>
    %259 = vector.broadcast %8 : vector<8x1xf32> to vector<8x64xf32>
    %260 = arith.mulf %258, %259 : vector<8x64xf32>
    %c7_i32_61 = arith.constant 7 : i32
    %261 = tpu.dynamic_rotate %255 by %c7_i32_61 dim 0 : vector<8x64xf32>, i32 -> vector<8x64xf32>
    %262 = vector.broadcast %12 : vector<8x1xf32> to vector<8x64xf32>
    %263 = arith.mulf %261, %262 : vector<8x64xf32>
    %264 = vector.extract_strided_slice %257 {offsets = [0, 0], sizes = [1, 64], strides = [1, 1]} : vector<3x64xf32> to vector<1x64xf32>
    %265 = vector.shape_cast %264 : vector<1x64xf32> to vector<64xf32>
    %266 = vector.shape_cast %265 : vector<64xf32> to vector<1x64xf32>
    %267 = vector.broadcast %266 : vector<1x64xf32> to vector<8x64xf32>
    %268 = arith.mulf %260, %267 : vector<8x64xf32>
    %269 = vector.extract_strided_slice %257 {offsets = [1, 0], sizes = [1, 64], strides = [1, 1]} : vector<3x64xf32> to vector<1x64xf32>
    %270 = vector.shape_cast %269 : vector<1x64xf32> to vector<64xf32>
    %271 = vector.shape_cast %270 : vector<64xf32> to vector<1x64xf32>
    %272 = vector.broadcast %271 : vector<1x64xf32> to vector<8x64xf32>
    %273 = arith.mulf %255, %272 : vector<8x64xf32>
    %274 = arith.addf %268, %273 : vector<8x64xf32>
    %275 = vector.extract_strided_slice %257 {offsets = [2, 0], sizes = [1, 64], strides = [1, 1]} : vector<3x64xf32> to vector<1x64xf32>
    %276 = vector.shape_cast %275 : vector<1x64xf32> to vector<64xf32>
    %277 = vector.shape_cast %276 : vector<64xf32> to vector<1x64xf32>
    %278 = vector.broadcast %277 : vector<1x64xf32> to vector<8x64xf32>
    %279 = arith.mulf %263, %278 : vector<8x64xf32>
    %280 = arith.addf %274, %279 : vector<8x64xf32>
    %281 = arith.addf %251, %280 : vector<8x64xf32>
    %c1_i32_62 = arith.constant 1 : i32
    %282 = arith.addi %218, %c1_i32_62 : i32
    %c0_63 = arith.constant 0 : index
    %283 = arith.index_cast %282 : i32 to index
    %c0_64 = arith.constant 0 : index
    %c0_65 = arith.constant 0 : index
    %284 = vector.load %arg2[%c0_63, %283, %c0_64, %c0_65] : memref<1x8x8x64xf32, #tpu.memory_space<vmem>>, vector<1x1x8x64xf32>
    %285 = vector.shape_cast %284 : vector<1x1x8x64xf32> to vector<1x8x64xf32>
    %286 = vector.shape_cast %285 : vector<1x8x64xf32> to vector<8x64xf32>
    %287 = vector.extract_strided_slice %1 {offsets = [2, 0, 0], sizes = [1, 3, 64], strides = [1, 1, 1]} : vector<3x3x64xf32> to vector<1x3x64xf32>
    %288 = vector.shape_cast %287 : vector<1x3x64xf32> to vector<3x64xf32>
    %c1_i32_66 = arith.constant 1 : i32
    %289 = tpu.dynamic_rotate %286 by %c1_i32_66 dim 0 : vector<8x64xf32>, i32 -> vector<8x64xf32>
    %290 = vector.broadcast %8 : vector<8x1xf32> to vector<8x64xf32>
    %291 = arith.mulf %289, %290 : vector<8x64xf32>
    %c7_i32_67 = arith.constant 7 : i32
    %292 = tpu.dynamic_rotate %286 by %c7_i32_67 dim 0 : vector<8x64xf32>, i32 -> vector<8x64xf32>
    %293 = vector.broadcast %12 : vector<8x1xf32> to vector<8x64xf32>
    %294 = arith.mulf %292, %293 : vector<8x64xf32>
    %295 = vector.extract_strided_slice %288 {offsets = [0, 0], sizes = [1, 64], strides = [1, 1]} : vector<3x64xf32> to vector<1x64xf32>
    %296 = vector.shape_cast %295 : vector<1x64xf32> to vector<64xf32>
    %297 = vector.shape_cast %296 : vector<64xf32> to vector<1x64xf32>
    %298 = vector.broadcast %297 : vector<1x64xf32> to vector<8x64xf32>
    %299 = arith.mulf %291, %298 : vector<8x64xf32>
    %300 = vector.extract_strided_slice %288 {offsets = [1, 0], sizes = [1, 64], strides = [1, 1]} : vector<3x64xf32> to vector<1x64xf32>
    %301 = vector.shape_cast %300 : vector<1x64xf32> to vector<64xf32>
    %302 = vector.shape_cast %301 : vector<64xf32> to vector<1x64xf32>
    %303 = vector.broadcast %302 : vector<1x64xf32> to vector<8x64xf32>
    %304 = arith.mulf %286, %303 : vector<8x64xf32>
    %305 = arith.addf %299, %304 : vector<8x64xf32>
    %306 = vector.extract_strided_slice %288 {offsets = [2, 0], sizes = [1, 64], strides = [1, 1]} : vector<3x64xf32> to vector<1x64xf32>
    %307 = vector.shape_cast %306 : vector<1x64xf32> to vector<64xf32>
    %308 = vector.shape_cast %307 : vector<64xf32> to vector<1x64xf32>
    %309 = vector.broadcast %308 : vector<1x64xf32> to vector<8x64xf32>
    %310 = arith.mulf %294, %309 : vector<8x64xf32>
    %311 = arith.addf %305, %310 : vector<8x64xf32>
    %312 = arith.addf %281, %311 : vector<8x64xf32>
    %c0_68 = arith.constant 0 : index
    %c2 = arith.constant 2 : index
    %c0_69 = arith.constant 0 : index
    %c0_70 = arith.constant 0 : index
    %313 = vector.load %arg5[%c0_68, %c2, %c0_69, %c0_70] : memref<1x8x8x64xf32, #tpu.memory_space<vmem>>, vector<1x1x8x64xf32>
    %314 = vector.shape_cast %313 : vector<1x1x8x64xf32> to vector<8x64xf32>
    %315 = vector.shape_cast %312 : vector<8x64xf32> to vector<1x1x8x64xf32>
    tpu.vector_store %arg5[%c0_68, %c2, %c0_69, %c0_70], %315 {strides = array<i32>} : memref<1x8x8x64xf32, #tpu.memory_space<vmem>>, vector<1x1x8x64xf32>,
    %c3_i32 = arith.constant 3 : i32
    %316 = arith.addi %0, %c3_i32 : i32
    %c1_i32_71 = arith.constant 1 : i32
    %317 = arith.subi %316, %c1_i32_71 : i32
    %c0_72 = arith.constant 0 : index
    %318 = arith.index_cast %317 : i32 to index
    %c0_73 = arith.constant 0 : index
    %c0_74 = arith.constant 0 : index
    %319 = vector.load %arg2[%c0_72, %318, %c0_73, %c0_74] : memref<1x8x8x64xf32, #tpu.memory_space<vmem>>, vector<1x1x8x64xf32>
    %320 = vector.shape_cast %319 : vector<1x1x8x64xf32> to vector<1x8x64xf32>
    %321 = vector.shape_cast %320 : vector<1x8x64xf32> to vector<8x64xf32>
    %322 = vector.extract_strided_slice %1 {offsets = [0, 0, 0], sizes = [1, 3, 64], strides = [1, 1, 1]} : vector<3x3x64xf32> to vector<1x3x64xf32>
    %323 = vector.shape_cast %322 : vector<1x3x64xf32> to vector<3x64xf32>
    %c1_i32_75 = arith.constant 1 : i32
    %324 = tpu.dynamic_rotate %321 by %c1_i32_75 dim 0 : vector<8x64xf32>, i32 -> vector<8x64xf32>
    %325 = vector.broadcast %8 : vector<8x1xf32> to vector<8x64xf32>
    %326 = arith.mulf %324, %325 : vector<8x64xf32>
    %c7_i32_76 = arith.constant 7 : i32
    %327 = tpu.dynamic_rotate %321 by %c7_i32_76 dim 0 : vector<8x64xf32>, i32 -> vector<8x64xf32>
    %328 = vector.broadcast %12 : vector<8x1xf32> to vector<8x64xf32>
    %329 = arith.mulf %327, %328 : vector<8x64xf32>
    %330 = vector.extract_strided_slice %323 {offsets = [0, 0], sizes = [1, 64], strides = [1, 1]} : vector<3x64xf32> to vector<1x64xf32>
    %331 = vector.shape_cast %330 : vector<1x64xf32> to vector<64xf32>
    %332 = vector.shape_cast %331 : vector<64xf32> to vector<1x64xf32>
    %333 = vector.broadcast %332 : vector<1x64xf32> to vector<8x64xf32>
    %334 = arith.mulf %326, %333 : vector<8x64xf32>
    %335 = vector.extract_strided_slice %323 {offsets = [1, 0], sizes = [1, 64], strides = [1, 1]} : vector<3x64xf32> to vector<1x64xf32>
    %336 = vector.shape_cast %335 : vector<1x64xf32> to vector<64xf32>
    %337 = vector.shape_cast %336 : vector<64xf32> to vector<1x64xf32>
    %338 = vector.broadcast %337 : vector<1x64xf32> to vector<8x64xf32>
    %339 = arith.mulf %321, %338 : vector<8x64xf32>
    %340 = arith.addf %334, %339 : vector<8x64xf32>
    %341 = vector.extract_strided_slice %323 {offsets = [2, 0], sizes = [1, 64], strides = [1, 1]} : vector<3x64xf32> to vector<1x64xf32>
    %342 = vector.shape_cast %341 : vector<1x64xf32> to vector<64xf32>
    %343 = vector.shape_cast %342 : vector<64xf32> to vector<1x64xf32>
    %344 = vector.broadcast %343 : vector<1x64xf32> to vector<8x64xf32>
    %345 = arith.mulf %329, %344 : vector<8x64xf32>
    %346 = arith.addf %340, %345 : vector<8x64xf32>
    %347 = vector.shape_cast %3 : vector<64xf32> to vector<1x64xf32>
    %348 = vector.broadcast %347 : vector<1x64xf32> to vector<8x64xf32>
    %349 = arith.addf %348, %346 : vector<8x64xf32>
    %c0_77 = arith.constant 0 : index
    %350 = arith.index_cast %316 : i32 to index
    %c0_78 = arith.constant 0 : index
    %c0_79 = arith.constant 0 : index
    %351 = vector.load %arg2[%c0_77, %350, %c0_78, %c0_79] : memref<1x8x8x64xf32, #tpu.memory_space<vmem>>, vector<1x1x8x64xf32>
    %352 = vector.shape_cast %351 : vector<1x1x8x64xf32> to vector<1x8x64xf32>
    %353 = vector.shape_cast %352 : vector<1x8x64xf32> to vector<8x64xf32>
    %354 = vector.extract_strided_slice %1 {offsets = [1, 0, 0], sizes = [1, 3, 64], strides = [1, 1, 1]} : vector<3x3x64xf32> to vector<1x3x64xf32>
    %355 = vector.shape_cast %354 : vector<1x3x64xf32> to vector<3x64xf32>
    %c1_i32_80 = arith.constant 1 : i32
    %356 = tpu.dynamic_rotate %353 by %c1_i32_80 dim 0 : vector<8x64xf32>, i32 -> vector<8x64xf32>
    %357 = vector.broadcast %8 : vector<8x1xf32> to vector<8x64xf32>
    %358 = arith.mulf %356, %357 : vector<8x64xf32>
    %c7_i32_81 = arith.constant 7 : i32
    %359 = tpu.dynamic_rotate %353 by %c7_i32_81 dim 0 : vector<8x64xf32>, i32 -> vector<8x64xf32>
    %360 = vector.broadcast %12 : vector<8x1xf32> to vector<8x64xf32>
    %361 = arith.mulf %359, %360 : vector<8x64xf32>
    %362 = vector.extract_strided_slice %355 {offsets = [0, 0], sizes = [1, 64], strides = [1, 1]} : vector<3x64xf32> to vector<1x64xf32>
    %363 = vector.shape_cast %362 : vector<1x64xf32> to vector<64xf32>
    %364 = vector.shape_cast %363 : vector<64xf32> to vector<1x64xf32>
    %365 = vector.broadcast %364 : vector<1x64xf32> to vector<8x64xf32>
    %366 = arith.mulf %358, %365 : vector<8x64xf32>
    %367 = vector.extract_strided_slice %355 {offsets = [1, 0], sizes = [1, 64], strides = [1, 1]} : vector<3x64xf32> to vector<1x64xf32>
    %368 = vector.shape_cast %367 : vector<1x64xf32> to vector<64xf32>
    %369 = vector.shape_cast %368 : vector<64xf32> to vector<1x64xf32>
    %370 = vector.broadcast %369 : vector<1x64xf32> to vector<8x64xf32>
    %371 = arith.mulf %353, %370 : vector<8x64xf32>
    %372 = arith.addf %366, %371 : vector<8x64xf32>
    %373 = vector.extract_strided_slice %355 {offsets = [2, 0], sizes = [1, 64], strides = [1, 1]} : vector<3x64xf32> to vector<1x64xf32>
    %374 = vector.shape_cast %373 : vector<1x64xf32> to vector<64xf32>
    %375 = vector.shape_cast %374 : vector<64xf32> to vector<1x64xf32>
    %376 = vector.broadcast %375 : vector<1x64xf32> to vector<8x64xf32>
    %377 = arith.mulf %361, %376 : vector<8x64xf32>
    %378 = arith.addf %372, %377 : vector<8x64xf32>
    %379 = arith.addf %349, %378 : vector<8x64xf32>
    %c1_i32_82 = arith.constant 1 : i32
    %380 = arith.addi %316, %c1_i32_82 : i32
    %c0_83 = arith.constant 0 : index
    %381 = arith.index_cast %380 : i32 to index
    %c0_84 = arith.constant 0 : index
    %c0_85 = arith.constant 0 : index
    %382 = vector.load %arg2[%c0_83, %381, %c0_84, %c0_85] : memref<1x8x8x64xf32, #tpu.memory_space<vmem>>, vector<1x1x8x64xf32>
    %383 = vector.shape_cast %382 : vector<1x1x8x64xf32> to vector<1x8x64xf32>
    %384 = vector.shape_cast %383 : vector<1x8x64xf32> to vector<8x64xf32>
    %385 = vector.extract_strided_slice %1 {offsets = [2, 0, 0], sizes = [1, 3, 64], strides = [1, 1, 1]} : vector<3x3x64xf32> to vector<1x3x64xf32>
    %386 = vector.shape_cast %385 : vector<1x3x64xf32> to vector<3x64xf32>
    %c1_i32_86 = arith.constant 1 : i32
    %387 = tpu.dynamic_rotate %384 by %c1_i32_86 dim 0 : vector<8x64xf32>, i32 -> vector<8x64xf32>
    %388 = vector.broadcast %8 : vector<8x1xf32> to vector<8x64xf32>
    %389 = arith.mulf %387, %388 : vector<8x64xf32>
    %c7_i32_87 = arith.constant 7 : i32
    %390 = tpu.dynamic_rotate %384 by %c7_i32_87 dim 0 : vector<8x64xf32>, i32 -> vector<8x64xf32>
    %391 = vector.broadcast %12 : vector<8x1xf32> to vector<8x64xf32>
    %392 = arith.mulf %390, %391 : vector<8x64xf32>
    %393 = vector.extract_strided_slice %386 {offsets = [0, 0], sizes = [1, 64], strides = [1, 1]} : vector<3x64xf32> to vector<1x64xf32>
    %394 = vector.shape_cast %393 : vector<1x64xf32> to vector<64xf32>
    %395 = vector.shape_cast %394 : vector<64xf32> to vector<1x64xf32>
    %396 = vector.broadcast %395 : vector<1x64xf32> to vector<8x64xf32>
    %397 = arith.mulf %389, %396 : vector<8x64xf32>
    %398 = vector.extract_strided_slice %386 {offsets = [1, 0], sizes = [1, 64], strides = [1, 1]} : vector<3x64xf32> to vector<1x64xf32>
    %399 = vector.shape_cast %398 : vector<1x64xf32> to vector<64xf32>
    %400 = vector.shape_cast %399 : vector<64xf32> to vector<1x64xf32>
    %401 = vector.broadcast %400 : vector<1x64xf32> to vector<8x64xf32>
    %402 = arith.mulf %384, %401 : vector<8x64xf32>
    %403 = arith.addf %397, %402 : vector<8x64xf32>
    %404 = vector.extract_strided_slice %386 {offsets = [2, 0], sizes = [1, 64], strides = [1, 1]} : vector<3x64xf32> to vector<1x64xf32>
    %405 = vector.shape_cast %404 : vector<1x64xf32> to vector<64xf32>
    %406 = vector.shape_cast %405 : vector<64xf32> to vector<1x64xf32>
    %407 = vector.broadcast %406 : vector<1x64xf32> to vector<8x64xf32>
    %408 = arith.mulf %392, %407 : vector<8x64xf32>
    %409 = arith.addf %403, %408 : vector<8x64xf32>
    %410 = arith.addf %379, %409 : vector<8x64xf32>
    %c0_88 = arith.constant 0 : index
    %c3 = arith.constant 3 : index
    %c0_89 = arith.constant 0 : index
    %c0_90 = arith.constant 0 : index
    %411 = vector.load %arg5[%c0_88, %c3, %c0_89, %c0_90] : memref<1x8x8x64xf32, #tpu.memory_space<vmem>>, vector<1x1x8x64xf32>
    %412 = vector.shape_cast %411 : vector<1x1x8x64xf32> to vector<8x64xf32>
    %413 = vector.shape_cast %410 : vector<8x64xf32> to vector<1x1x8x64xf32>
    tpu.vector_store %arg5[%c0_88, %c3, %c0_89, %c0_90], %413 {strides = array<i32>} : memref<1x8x8x64xf32, #tpu.memory_space<vmem>>, vector<1x1x8x64xf32>,
    %c4_i32 = arith.constant 4 : i32
    %414 = arith.addi %0, %c4_i32 : i32
    %c1_i32_91 = arith.constant 1 : i32
    %415 = arith.subi %414, %c1_i32_91 : i32
    %c0_92 = arith.constant 0 : index
    %416 = arith.index_cast %415 : i32 to index
    %c0_93 = arith.constant 0 : index
    %c0_94 = arith.constant 0 : index
    %417 = vector.load %arg2[%c0_92, %416, %c0_93, %c0_94] : memref<1x8x8x64xf32, #tpu.memory_space<vmem>>, vector<1x1x8x64xf32>
    %418 = vector.shape_cast %417 : vector<1x1x8x64xf32> to vector<1x8x64xf32>
    %419 = vector.shape_cast %418 : vector<1x8x64xf32> to vector<8x64xf32>
    %420 = vector.extract_strided_slice %1 {offsets = [0, 0, 0], sizes = [1, 3, 64], strides = [1, 1, 1]} : vector<3x3x64xf32> to vector<1x3x64xf32>
    %421 = vector.shape_cast %420 : vector<1x3x64xf32> to vector<3x64xf32>
    %c1_i32_95 = arith.constant 1 : i32
    %422 = tpu.dynamic_rotate %419 by %c1_i32_95 dim 0 : vector<8x64xf32>, i32 -> vector<8x64xf32>
    %423 = vector.broadcast %8 : vector<8x1xf32> to vector<8x64xf32>
    %424 = arith.mulf %422, %423 : vector<8x64xf32>
    %c7_i32_96 = arith.constant 7 : i32
    %425 = tpu.dynamic_rotate %419 by %c7_i32_96 dim 0 : vector<8x64xf32>, i32 -> vector<8x64xf32>
    %426 = vector.broadcast %12 : vector<8x1xf32> to vector<8x64xf32>
    %427 = arith.mulf %425, %426 : vector<8x64xf32>
    %428 = vector.extract_strided_slice %421 {offsets = [0, 0], sizes = [1, 64], strides = [1, 1]} : vector<3x64xf32> to vector<1x64xf32>
    %429 = vector.shape_cast %428 : vector<1x64xf32> to vector<64xf32>
    %430 = vector.shape_cast %429 : vector<64xf32> to vector<1x64xf32>
    %431 = vector.broadcast %430 : vector<1x64xf32> to vector<8x64xf32>
    %432 = arith.mulf %424, %431 : vector<8x64xf32>
    %433 = vector.extract_strided_slice %421 {offsets = [1, 0], sizes = [1, 64], strides = [1, 1]} : vector<3x64xf32> to vector<1x64xf32>
    %434 = vector.shape_cast %433 : vector<1x64xf32> to vector<64xf32>
    %435 = vector.shape_cast %434 : vector<64xf32> to vector<1x64xf32>
    %436 = vector.broadcast %435 : vector<1x64xf32> to vector<8x64xf32>
    %437 = arith.mulf %419, %436 : vector<8x64xf32>
    %438 = arith.addf %432, %437 : vector<8x64xf32>
    %439 = vector.extract_strided_slice %421 {offsets = [2, 0], sizes = [1, 64], strides = [1, 1]} : vector<3x64xf32> to vector<1x64xf32>
    %440 = vector.shape_cast %439 : vector<1x64xf32> to vector<64xf32>
    %441 = vector.shape_cast %440 : vector<64xf32> to vector<1x64xf32>
    %442 = vector.broadcast %441 : vector<1x64xf32> to vector<8x64xf32>
    %443 = arith.mulf %427, %442 : vector<8x64xf32>
    %444 = arith.addf %438, %443 : vector<8x64xf32>
    %445 = vector.shape_cast %3 : vector<64xf32> to vector<1x64xf32>
    %446 = vector.broadcast %445 : vector<1x64xf32> to vector<8x64xf32>
    %447 = arith.addf %446, %444 : vector<8x64xf32>
    %c0_97 = arith.constant 0 : index
    %448 = arith.index_cast %414 : i32 to index
    %c0_98 = arith.constant 0 : index
    %c0_99 = arith.constant 0 : index
    %449 = vector.load %arg2[%c0_97, %448, %c0_98, %c0_99] : memref<1x8x8x64xf32, #tpu.memory_space<vmem>>, vector<1x1x8x64xf32>
    %450 = vector.shape_cast %449 : vector<1x1x8x64xf32> to vector<1x8x64xf32>
    %451 = vector.shape_cast %450 : vector<1x8x64xf32> to vector<8x64xf32>
    %452 = vector.extract_strided_slice %1 {offsets = [1, 0, 0], sizes = [1, 3, 64], strides = [1, 1, 1]} : vector<3x3x64xf32> to vector<1x3x64xf32>
    %453 = vector.shape_cast %452 : vector<1x3x64xf32> to vector<3x64xf32>
    %c1_i32_100 = arith.constant 1 : i32
    %454 = tpu.dynamic_rotate %451 by %c1_i32_100 dim 0 : vector<8x64xf32>, i32 -> vector<8x64xf32>
    %455 = vector.broadcast %8 : vector<8x1xf32> to vector<8x64xf32>
    %456 = arith.mulf %454, %455 : vector<8x64xf32>
    %c7_i32_101 = arith.constant 7 : i32
    %457 = tpu.dynamic_rotate %451 by %c7_i32_101 dim 0 : vector<8x64xf32>, i32 -> vector<8x64xf32>
    %458 = vector.broadcast %12 : vector<8x1xf32> to vector<8x64xf32>
    %459 = arith.mulf %457, %458 : vector<8x64xf32>
    %460 = vector.extract_strided_slice %453 {offsets = [0, 0], sizes = [1, 64], strides = [1, 1]} : vector<3x64xf32> to vector<1x64xf32>
    %461 = vector.shape_cast %460 : vector<1x64xf32> to vector<64xf32>
    %462 = vector.shape_cast %461 : vector<64xf32> to vector<1x64xf32>
    %463 = vector.broadcast %462 : vector<1x64xf32> to vector<8x64xf32>
    %464 = arith.mulf %456, %463 : vector<8x64xf32>
    %465 = vector.extract_strided_slice %453 {offsets = [1, 0], sizes = [1, 64], strides = [1, 1]} : vector<3x64xf32> to vector<1x64xf32>
    %466 = vector.shape_cast %465 : vector<1x64xf32> to vector<64xf32>
    %467 = vector.shape_cast %466 : vector<64xf32> to vector<1x64xf32>
    %468 = vector.broadcast %467 : vector<1x64xf32> to vector<8x64xf32>
    %469 = arith.mulf %451, %468 : vector<8x64xf32>
    %470 = arith.addf %464, %469 : vector<8x64xf32>
    %471 = vector.extract_strided_slice %453 {offsets = [2, 0], sizes = [1, 64], strides = [1, 1]} : vector<3x64xf32> to vector<1x64xf32>
    %472 = vector.shape_cast %471 : vector<1x64xf32> to vector<64xf32>
    %473 = vector.shape_cast %472 : vector<64xf32> to vector<1x64xf32>
    %474 = vector.broadcast %473 : vector<1x64xf32> to vector<8x64xf32>
    %475 = arith.mulf %459, %474 : vector<8x64xf32>
    %476 = arith.addf %470, %475 : vector<8x64xf32>
    %477 = arith.addf %447, %476 : vector<8x64xf32>
    %c1_i32_102 = arith.constant 1 : i32
    %478 = arith.addi %414, %c1_i32_102 : i32
    %c0_103 = arith.constant 0 : index
    %479 = arith.index_cast %478 : i32 to index
    %c0_104 = arith.constant 0 : index
    %c0_105 = arith.constant 0 : index
    %480 = vector.load %arg2[%c0_103, %479, %c0_104, %c0_105] : memref<1x8x8x64xf32, #tpu.memory_space<vmem>>, vector<1x1x8x64xf32>
    %481 = vector.shape_cast %480 : vector<1x1x8x64xf32> to vector<1x8x64xf32>
    %482 = vector.shape_cast %481 : vector<1x8x64xf32> to vector<8x64xf32>
    %483 = vector.extract_strided_slice %1 {offsets = [2, 0, 0], sizes = [1, 3, 64], strides = [1, 1, 1]} : vector<3x3x64xf32> to vector<1x3x64xf32>
    %484 = vector.shape_cast %483 : vector<1x3x64xf32> to vector<3x64xf32>
    %c1_i32_106 = arith.constant 1 : i32
    %485 = tpu.dynamic_rotate %482 by %c1_i32_106 dim 0 : vector<8x64xf32>, i32 -> vector<8x64xf32>
    %486 = vector.broadcast %8 : vector<8x1xf32> to vector<8x64xf32>
    %487 = arith.mulf %485, %486 : vector<8x64xf32>
    %c7_i32_107 = arith.constant 7 : i32
    %488 = tpu.dynamic_rotate %482 by %c7_i32_107 dim 0 : vector<8x64xf32>, i32 -> vector<8x64xf32>
    %489 = vector.broadcast %12 : vector<8x1xf32> to vector<8x64xf32>
    %490 = arith.mulf %488, %489 : vector<8x64xf32>
    %491 = vector.extract_strided_slice %484 {offsets = [0, 0], sizes = [1, 64], strides = [1, 1]} : vector<3x64xf32> to vector<1x64xf32>
    %492 = vector.shape_cast %491 : vector<1x64xf32> to vector<64xf32>
    %493 = vector.shape_cast %492 : vector<64xf32> to vector<1x64xf32>
    %494 = vector.broadcast %493 : vector<1x64xf32> to vector<8x64xf32>
    %495 = arith.mulf %487, %494 : vector<8x64xf32>
    %496 = vector.extract_strided_slice %484 {offsets = [1, 0], sizes = [1, 64], strides = [1, 1]} : vector<3x64xf32> to vector<1x64xf32>
    %497 = vector.shape_cast %496 : vector<1x64xf32> to vector<64xf32>
    %498 = vector.shape_cast %497 : vector<64xf32> to vector<1x64xf32>
    %499 = vector.broadcast %498 : vector<1x64xf32> to vector<8x64xf32>
    %500 = arith.mulf %482, %499 : vector<8x64xf32>
    %501 = arith.addf %495, %500 : vector<8x64xf32>
    %502 = vector.extract_strided_slice %484 {offsets = [2, 0], sizes = [1, 64], strides = [1, 1]} : vector<3x64xf32> to vector<1x64xf32>
    %503 = vector.shape_cast %502 : vector<1x64xf32> to vector<64xf32>
    %504 = vector.shape_cast %503 : vector<64xf32> to vector<1x64xf32>
    %505 = vector.broadcast %504 : vector<1x64xf32> to vector<8x64xf32>
    %506 = arith.mulf %490, %505 : vector<8x64xf32>
    %507 = arith.addf %501, %506 : vector<8x64xf32>
    %508 = arith.addf %477, %507 : vector<8x64xf32>
    %c0_108 = arith.constant 0 : index
    %c4 = arith.constant 4 : index
    %c0_109 = arith.constant 0 : index
    %c0_110 = arith.constant 0 : index
    %509 = vector.load %arg5[%c0_108, %c4, %c0_109, %c0_110] : memref<1x8x8x64xf32, #tpu.memory_space<vmem>>, vector<1x1x8x64xf32>
    %510 = vector.shape_cast %509 : vector<1x1x8x64xf32> to vector<8x64xf32>
    %511 = vector.shape_cast %508 : vector<8x64xf32> to vector<1x1x8x64xf32>
    tpu.vector_store %arg5[%c0_108, %c4, %c0_109, %c0_110], %511 {strides = array<i32>} : memref<1x8x8x64xf32, #tpu.memory_space<vmem>>, vector<1x1x8x64xf32>,
    %c5_i32 = arith.constant 5 : i32
    %512 = arith.addi %0, %c5_i32 : i32
    %c1_i32_111 = arith.constant 1 : i32
    %513 = arith.subi %512, %c1_i32_111 : i32
    %c0_112 = arith.constant 0 : index
    %514 = arith.index_cast %513 : i32 to index
    %c0_113 = arith.constant 0 : index
    %c0_114 = arith.constant 0 : index
    %515 = vector.load %arg2[%c0_112, %514, %c0_113, %c0_114] : memref<1x8x8x64xf32, #tpu.memory_space<vmem>>, vector<1x1x8x64xf32>
    %516 = vector.shape_cast %515 : vector<1x1x8x64xf32> to vector<1x8x64xf32>
    %517 = vector.shape_cast %516 : vector<1x8x64xf32> to vector<8x64xf32>
    %518 = vector.extract_strided_slice %1 {offsets = [0, 0, 0], sizes = [1, 3, 64], strides = [1, 1, 1]} : vector<3x3x64xf32> to vector<1x3x64xf32>
    %519 = vector.shape_cast %518 : vector<1x3x64xf32> to vector<3x64xf32>
    %c1_i32_115 = arith.constant 1 : i32
    %520 = tpu.dynamic_rotate %517 by %c1_i32_115 dim 0 : vector<8x64xf32>, i32 -> vector<8x64xf32>
    %521 = vector.broadcast %8 : vector<8x1xf32> to vector<8x64xf32>
    %522 = arith.mulf %520, %521 : vector<8x64xf32>
    %c7_i32_116 = arith.constant 7 : i32
    %523 = tpu.dynamic_rotate %517 by %c7_i32_116 dim 0 : vector<8x64xf32>, i32 -> vector<8x64xf32>
    %524 = vector.broadcast %12 : vector<8x1xf32> to vector<8x64xf32>
    %525 = arith.mulf %523, %524 : vector<8x64xf32>
    %526 = vector.extract_strided_slice %519 {offsets = [0, 0], sizes = [1, 64], strides = [1, 1]} : vector<3x64xf32> to vector<1x64xf32>
    %527 = vector.shape_cast %526 : vector<1x64xf32> to vector<64xf32>
    %528 = vector.shape_cast %527 : vector<64xf32> to vector<1x64xf32>
    %529 = vector.broadcast %528 : vector<1x64xf32> to vector<8x64xf32>
    %530 = arith.mulf %522, %529 : vector<8x64xf32>
    %531 = vector.extract_strided_slice %519 {offsets = [1, 0], sizes = [1, 64], strides = [1, 1]} : vector<3x64xf32> to vector<1x64xf32>
    %532 = vector.shape_cast %531 : vector<1x64xf32> to vector<64xf32>
    %533 = vector.shape_cast %532 : vector<64xf32> to vector<1x64xf32>
    %534 = vector.broadcast %533 : vector<1x64xf32> to vector<8x64xf32>
    %535 = arith.mulf %517, %534 : vector<8x64xf32>
    %536 = arith.addf %530, %535 : vector<8x64xf32>
    %537 = vector.extract_strided_slice %519 {offsets = [2, 0], sizes = [1, 64], strides = [1, 1]} : vector<3x64xf32> to vector<1x64xf32>
    %538 = vector.shape_cast %537 : vector<1x64xf32> to vector<64xf32>
    %539 = vector.shape_cast %538 : vector<64xf32> to vector<1x64xf32>
    %540 = vector.broadcast %539 : vector<1x64xf32> to vector<8x64xf32>
    %541 = arith.mulf %525, %540 : vector<8x64xf32>
    %542 = arith.addf %536, %541 : vector<8x64xf32>
    %543 = vector.shape_cast %3 : vector<64xf32> to vector<1x64xf32>
    %544 = vector.broadcast %543 : vector<1x64xf32> to vector<8x64xf32>
    %545 = arith.addf %544, %542 : vector<8x64xf32>
    %c0_117 = arith.constant 0 : index
    %546 = arith.index_cast %512 : i32 to index
    %c0_118 = arith.constant 0 : index
    %c0_119 = arith.constant 0 : index
    %547 = vector.load %arg2[%c0_117, %546, %c0_118, %c0_119] : memref<1x8x8x64xf32, #tpu.memory_space<vmem>>, vector<1x1x8x64xf32>
    %548 = vector.shape_cast %547 : vector<1x1x8x64xf32> to vector<1x8x64xf32>
    %549 = vector.shape_cast %548 : vector<1x8x64xf32> to vector<8x64xf32>
    %550 = vector.extract_strided_slice %1 {offsets = [1, 0, 0], sizes = [1, 3, 64], strides = [1, 1, 1]} : vector<3x3x64xf32> to vector<1x3x64xf32>
    %551 = vector.shape_cast %550 : vector<1x3x64xf32> to vector<3x64xf32>
    %c1_i32_120 = arith.constant 1 : i32
    %552 = tpu.dynamic_rotate %549 by %c1_i32_120 dim 0 : vector<8x64xf32>, i32 -> vector<8x64xf32>
    %553 = vector.broadcast %8 : vector<8x1xf32> to vector<8x64xf32>
    %554 = arith.mulf %552, %553 : vector<8x64xf32>
    %c7_i32_121 = arith.constant 7 : i32
    %555 = tpu.dynamic_rotate %549 by %c7_i32_121 dim 0 : vector<8x64xf32>, i32 -> vector<8x64xf32>
    %556 = vector.broadcast %12 : vector<8x1xf32> to vector<8x64xf32>
    %557 = arith.mulf %555, %556 : vector<8x64xf32>
    %558 = vector.extract_strided_slice %551 {offsets = [0, 0], sizes = [1, 64], strides = [1, 1]} : vector<3x64xf32> to vector<1x64xf32>
    %559 = vector.shape_cast %558 : vector<1x64xf32> to vector<64xf32>
    %560 = vector.shape_cast %559 : vector<64xf32> to vector<1x64xf32>
    %561 = vector.broadcast %560 : vector<1x64xf32> to vector<8x64xf32>
    %562 = arith.mulf %554, %561 : vector<8x64xf32>
    %563 = vector.extract_strided_slice %551 {offsets = [1, 0], sizes = [1, 64], strides = [1, 1]} : vector<3x64xf32> to vector<1x64xf32>
    %564 = vector.shape_cast %563 : vector<1x64xf32> to vector<64xf32>
    %565 = vector.shape_cast %564 : vector<64xf32> to vector<1x64xf32>
    %566 = vector.broadcast %565 : vector<1x64xf32> to vector<8x64xf32>
    %567 = arith.mulf %549, %566 : vector<8x64xf32>
    %568 = arith.addf %562, %567 : vector<8x64xf32>
    %569 = vector.extract_strided_slice %551 {offsets = [2, 0], sizes = [1, 64], strides = [1, 1]} : vector<3x64xf32> to vector<1x64xf32>
    %570 = vector.shape_cast %569 : vector<1x64xf32> to vector<64xf32>
    %571 = vector.shape_cast %570 : vector<64xf32> to vector<1x64xf32>
    %572 = vector.broadcast %571 : vector<1x64xf32> to vector<8x64xf32>
    %573 = arith.mulf %557, %572 : vector<8x64xf32>
    %574 = arith.addf %568, %573 : vector<8x64xf32>
    %575 = arith.addf %545, %574 : vector<8x64xf32>
    %c1_i32_122 = arith.constant 1 : i32
    %576 = arith.addi %512, %c1_i32_122 : i32
    %c0_123 = arith.constant 0 : index
    %577 = arith.index_cast %576 : i32 to index
    %c0_124 = arith.constant 0 : index
    %c0_125 = arith.constant 0 : index
    %578 = vector.load %arg2[%c0_123, %577, %c0_124, %c0_125] : memref<1x8x8x64xf32, #tpu.memory_space<vmem>>, vector<1x1x8x64xf32>
    %579 = vector.shape_cast %578 : vector<1x1x8x64xf32> to vector<1x8x64xf32>
    %580 = vector.shape_cast %579 : vector<1x8x64xf32> to vector<8x64xf32>
    %581 = vector.extract_strided_slice %1 {offsets = [2, 0, 0], sizes = [1, 3, 64], strides = [1, 1, 1]} : vector<3x3x64xf32> to vector<1x3x64xf32>
    %582 = vector.shape_cast %581 : vector<1x3x64xf32> to vector<3x64xf32>
    %c1_i32_126 = arith.constant 1 : i32
    %583 = tpu.dynamic_rotate %580 by %c1_i32_126 dim 0 : vector<8x64xf32>, i32 -> vector<8x64xf32>
    %584 = vector.broadcast %8 : vector<8x1xf32> to vector<8x64xf32>
    %585 = arith.mulf %583, %584 : vector<8x64xf32>
    %c7_i32_127 = arith.constant 7 : i32
    %586 = tpu.dynamic_rotate %580 by %c7_i32_127 dim 0 : vector<8x64xf32>, i32 -> vector<8x64xf32>
    %587 = vector.broadcast %12 : vector<8x1xf32> to vector<8x64xf32>
    %588 = arith.mulf %586, %587 : vector<8x64xf32>
    %589 = vector.extract_strided_slice %582 {offsets = [0, 0], sizes = [1, 64], strides = [1, 1]} : vector<3x64xf32> to vector<1x64xf32>
    %590 = vector.shape_cast %589 : vector<1x64xf32> to vector<64xf32>
    %591 = vector.shape_cast %590 : vector<64xf32> to vector<1x64xf32>
    %592 = vector.broadcast %591 : vector<1x64xf32> to vector<8x64xf32>
    %593 = arith.mulf %585, %592 : vector<8x64xf32>
    %594 = vector.extract_strided_slice %582 {offsets = [1, 0], sizes = [1, 64], strides = [1, 1]} : vector<3x64xf32> to vector<1x64xf32>
    %595 = vector.shape_cast %594 : vector<1x64xf32> to vector<64xf32>
    %596 = vector.shape_cast %595 : vector<64xf32> to vector<1x64xf32>
    %597 = vector.broadcast %596 : vector<1x64xf32> to vector<8x64xf32>
    %598 = arith.mulf %580, %597 : vector<8x64xf32>
    %599 = arith.addf %593, %598 : vector<8x64xf32>
    %600 = vector.extract_strided_slice %582 {offsets = [2, 0], sizes = [1, 64], strides = [1, 1]} : vector<3x64xf32> to vector<1x64xf32>
    %601 = vector.shape_cast %600 : vector<1x64xf32> to vector<64xf32>
    %602 = vector.shape_cast %601 : vector<64xf32> to vector<1x64xf32>
    %603 = vector.broadcast %602 : vector<1x64xf32> to vector<8x64xf32>
    %604 = arith.mulf %588, %603 : vector<8x64xf32>
    %605 = arith.addf %599, %604 : vector<8x64xf32>
    %606 = arith.addf %575, %605 : vector<8x64xf32>
    %c0_128 = arith.constant 0 : index
    %c5 = arith.constant 5 : index
    %c0_129 = arith.constant 0 : index
    %c0_130 = arith.constant 0 : index
    %607 = vector.load %arg5[%c0_128, %c5, %c0_129, %c0_130] : memref<1x8x8x64xf32, #tpu.memory_space<vmem>>, vector<1x1x8x64xf32>
    %608 = vector.shape_cast %607 : vector<1x1x8x64xf32> to vector<8x64xf32>
    %609 = vector.shape_cast %606 : vector<8x64xf32> to vector<1x1x8x64xf32>
    tpu.vector_store %arg5[%c0_128, %c5, %c0_129, %c0_130], %609 {strides = array<i32>} : memref<1x8x8x64xf32, #tpu.memory_space<vmem>>, vector<1x1x8x64xf32>,
    %c6_i32 = arith.constant 6 : i32
    %610 = arith.addi %0, %c6_i32 : i32
    %c1_i32_131 = arith.constant 1 : i32
    %611 = arith.subi %610, %c1_i32_131 : i32
    %c0_132 = arith.constant 0 : index
    %612 = arith.index_cast %611 : i32 to index
    %c0_133 = arith.constant 0 : index
    %c0_134 = arith.constant 0 : index
    %613 = vector.load %arg2[%c0_132, %612, %c0_133, %c0_134] : memref<1x8x8x64xf32, #tpu.memory_space<vmem>>, vector<1x1x8x64xf32>
    %614 = vector.shape_cast %613 : vector<1x1x8x64xf32> to vector<1x8x64xf32>
    %615 = vector.shape_cast %614 : vector<1x8x64xf32> to vector<8x64xf32>
    %616 = vector.extract_strided_slice %1 {offsets = [0, 0, 0], sizes = [1, 3, 64], strides = [1, 1, 1]} : vector<3x3x64xf32> to vector<1x3x64xf32>
    %617 = vector.shape_cast %616 : vector<1x3x64xf32> to vector<3x64xf32>
    %c1_i32_135 = arith.constant 1 : i32
    %618 = tpu.dynamic_rotate %615 by %c1_i32_135 dim 0 : vector<8x64xf32>, i32 -> vector<8x64xf32>
    %619 = vector.broadcast %8 : vector<8x1xf32> to vector<8x64xf32>
    %620 = arith.mulf %618, %619 : vector<8x64xf32>
    %c7_i32_136 = arith.constant 7 : i32
    %621 = tpu.dynamic_rotate %615 by %c7_i32_136 dim 0 : vector<8x64xf32>, i32 -> vector<8x64xf32>
    %622 = vector.broadcast %12 : vector<8x1xf32> to vector<8x64xf32>
    %623 = arith.mulf %621, %622 : vector<8x64xf32>
    %624 = vector.extract_strided_slice %617 {offsets = [0, 0], sizes = [1, 64], strides = [1, 1]} : vector<3x64xf32> to vector<1x64xf32>
    %625 = vector.shape_cast %624 : vector<1x64xf32> to vector<64xf32>
    %626 = vector.shape_cast %625 : vector<64xf32> to vector<1x64xf32>
    %627 = vector.broadcast %626 : vector<1x64xf32> to vector<8x64xf32>
    %628 = arith.mulf %620, %627 : vector<8x64xf32>
    %629 = vector.extract_strided_slice %617 {offsets = [1, 0], sizes = [1, 64], strides = [1, 1]} : vector<3x64xf32> to vector<1x64xf32>
    %630 = vector.shape_cast %629 : vector<1x64xf32> to vector<64xf32>
    %631 = vector.shape_cast %630 : vector<64xf32> to vector<1x64xf32>
    %632 = vector.broadcast %631 : vector<1x64xf32> to vector<8x64xf32>
    %633 = arith.mulf %615, %632 : vector<8x64xf32>
    %634 = arith.addf %628, %633 : vector<8x64xf32>
    %635 = vector.extract_strided_slice %617 {offsets = [2, 0], sizes = [1, 64], strides = [1, 1]} : vector<3x64xf32> to vector<1x64xf32>
    %636 = vector.shape_cast %635 : vector<1x64xf32> to vector<64xf32>
    %637 = vector.shape_cast %636 : vector<64xf32> to vector<1x64xf32>
    %638 = vector.broadcast %637 : vector<1x64xf32> to vector<8x64xf32>
    %639 = arith.mulf %623, %638 : vector<8x64xf32>
    %640 = arith.addf %634, %639 : vector<8x64xf32>
    %641 = vector.shape_cast %3 : vector<64xf32> to vector<1x64xf32>
    %642 = vector.broadcast %641 : vector<1x64xf32> to vector<8x64xf32>
    %643 = arith.addf %642, %640 : vector<8x64xf32>
    %c0_137 = arith.constant 0 : index
    %644 = arith.index_cast %610 : i32 to index
    %c0_138 = arith.constant 0 : index
    %c0_139 = arith.constant 0 : index
    %645 = vector.load %arg2[%c0_137, %644, %c0_138, %c0_139] : memref<1x8x8x64xf32, #tpu.memory_space<vmem>>, vector<1x1x8x64xf32>
    %646 = vector.shape_cast %645 : vector<1x1x8x64xf32> to vector<1x8x64xf32>
    %647 = vector.shape_cast %646 : vector<1x8x64xf32> to vector<8x64xf32>
    %648 = vector.extract_strided_slice %1 {offsets = [1, 0, 0], sizes = [1, 3, 64], strides = [1, 1, 1]} : vector<3x3x64xf32> to vector<1x3x64xf32>
    %649 = vector.shape_cast %648 : vector<1x3x64xf32> to vector<3x64xf32>
    %c1_i32_140 = arith.constant 1 : i32
    %650 = tpu.dynamic_rotate %647 by %c1_i32_140 dim 0 : vector<8x64xf32>, i32 -> vector<8x64xf32>
    %651 = vector.broadcast %8 : vector<8x1xf32> to vector<8x64xf32>
    %652 = arith.mulf %650, %651 : vector<8x64xf32>
    %c7_i32_141 = arith.constant 7 : i32
    %653 = tpu.dynamic_rotate %647 by %c7_i32_141 dim 0 : vector<8x64xf32>, i32 -> vector<8x64xf32>
    %654 = vector.broadcast %12 : vector<8x1xf32> to vector<8x64xf32>
    %655 = arith.mulf %653, %654 : vector<8x64xf32>
    %656 = vector.extract_strided_slice %649 {offsets = [0, 0], sizes = [1, 64], strides = [1, 1]} : vector<3x64xf32> to vector<1x64xf32>
    %657 = vector.shape_cast %656 : vector<1x64xf32> to vector<64xf32>
    %658 = vector.shape_cast %657 : vector<64xf32> to vector<1x64xf32>
    %659 = vector.broadcast %658 : vector<1x64xf32> to vector<8x64xf32>
    %660 = arith.mulf %652, %659 : vector<8x64xf32>
    %661 = vector.extract_strided_slice %649 {offsets = [1, 0], sizes = [1, 64], strides = [1, 1]} : vector<3x64xf32> to vector<1x64xf32>
    %662 = vector.shape_cast %661 : vector<1x64xf32> to vector<64xf32>
    %663 = vector.shape_cast %662 : vector<64xf32> to vector<1x64xf32>
    %664 = vector.broadcast %663 : vector<1x64xf32> to vector<8x64xf32>
    %665 = arith.mulf %647, %664 : vector<8x64xf32>
    %666 = arith.addf %660, %665 : vector<8x64xf32>
    %667 = vector.extract_strided_slice %649 {offsets = [2, 0], sizes = [1, 64], strides = [1, 1]} : vector<3x64xf32> to vector<1x64xf32>
    %668 = vector.shape_cast %667 : vector<1x64xf32> to vector<64xf32>
    %669 = vector.shape_cast %668 : vector<64xf32> to vector<1x64xf32>
    %670 = vector.broadcast %669 : vector<1x64xf32> to vector<8x64xf32>
    %671 = arith.mulf %655, %670 : vector<8x64xf32>
    %672 = arith.addf %666, %671 : vector<8x64xf32>
    %673 = arith.addf %643, %672 : vector<8x64xf32>
    %c1_i32_142 = arith.constant 1 : i32
    %674 = arith.addi %610, %c1_i32_142 : i32
    %c0_143 = arith.constant 0 : index
    %675 = arith.index_cast %674 : i32 to index
    %c0_144 = arith.constant 0 : index
    %c0_145 = arith.constant 0 : index
    %676 = vector.load %arg2[%c0_143, %675, %c0_144, %c0_145] : memref<1x8x8x64xf32, #tpu.memory_space<vmem>>, vector<1x1x8x64xf32>
    %677 = vector.shape_cast %676 : vector<1x1x8x64xf32> to vector<1x8x64xf32>
    %678 = vector.shape_cast %677 : vector<1x8x64xf32> to vector<8x64xf32>
    %679 = vector.extract_strided_slice %1 {offsets = [2, 0, 0], sizes = [1, 3, 64], strides = [1, 1, 1]} : vector<3x3x64xf32> to vector<1x3x64xf32>
    %680 = vector.shape_cast %679 : vector<1x3x64xf32> to vector<3x64xf32>
    %c1_i32_146 = arith.constant 1 : i32
    %681 = tpu.dynamic_rotate %678 by %c1_i32_146 dim 0 : vector<8x64xf32>, i32 -> vector<8x64xf32>
    %682 = vector.broadcast %8 : vector<8x1xf32> to vector<8x64xf32>
    %683 = arith.mulf %681, %682 : vector<8x64xf32>
    %c7_i32_147 = arith.constant 7 : i32
    %684 = tpu.dynamic_rotate %678 by %c7_i32_147 dim 0 : vector<8x64xf32>, i32 -> vector<8x64xf32>
    %685 = vector.broadcast %12 : vector<8x1xf32> to vector<8x64xf32>
    %686 = arith.mulf %684, %685 : vector<8x64xf32>
    %687 = vector.extract_strided_slice %680 {offsets = [0, 0], sizes = [1, 64], strides = [1, 1]} : vector<3x64xf32> to vector<1x64xf32>
    %688 = vector.shape_cast %687 : vector<1x64xf32> to vector<64xf32>
    %689 = vector.shape_cast %688 : vector<64xf32> to vector<1x64xf32>
    %690 = vector.broadcast %689 : vector<1x64xf32> to vector<8x64xf32>
    %691 = arith.mulf %683, %690 : vector<8x64xf32>
    %692 = vector.extract_strided_slice %680 {offsets = [1, 0], sizes = [1, 64], strides = [1, 1]} : vector<3x64xf32> to vector<1x64xf32>
    %693 = vector.shape_cast %692 : vector<1x64xf32> to vector<64xf32>
    %694 = vector.shape_cast %693 : vector<64xf32> to vector<1x64xf32>
    %695 = vector.broadcast %694 : vector<1x64xf32> to vector<8x64xf32>
    %696 = arith.mulf %678, %695 : vector<8x64xf32>
    %697 = arith.addf %691, %696 : vector<8x64xf32>
    %698 = vector.extract_strided_slice %680 {offsets = [2, 0], sizes = [1, 64], strides = [1, 1]} : vector<3x64xf32> to vector<1x64xf32>
    %699 = vector.shape_cast %698 : vector<1x64xf32> to vector<64xf32>
    %700 = vector.shape_cast %699 : vector<64xf32> to vector<1x64xf32>
    %701 = vector.broadcast %700 : vector<1x64xf32> to vector<8x64xf32>
    %702 = arith.mulf %686, %701 : vector<8x64xf32>
    %703 = arith.addf %697, %702 : vector<8x64xf32>
    %704 = arith.addf %673, %703 : vector<8x64xf32>
    %c0_148 = arith.constant 0 : index
    %c6 = arith.constant 6 : index
    %c0_149 = arith.constant 0 : index
    %c0_150 = arith.constant 0 : index
    %705 = vector.load %arg5[%c0_148, %c6, %c0_149, %c0_150] : memref<1x8x8x64xf32, #tpu.memory_space<vmem>>, vector<1x1x8x64xf32>
    %706 = vector.shape_cast %705 : vector<1x1x8x64xf32> to vector<8x64xf32>
    %707 = vector.shape_cast %704 : vector<8x64xf32> to vector<1x1x8x64xf32>
    tpu.vector_store %arg5[%c0_148, %c6, %c0_149, %c0_150], %707 {strides = array<i32>} : memref<1x8x8x64xf32, #tpu.memory_space<vmem>>, vector<1x1x8x64xf32>,
    %c7_i32_151 = arith.constant 7 : i32
    %708 = arith.addi %0, %c7_i32_151 : i32
    %c1_i32_152 = arith.constant 1 : i32
    %709 = arith.subi %708, %c1_i32_152 : i32
    %c0_153 = arith.constant 0 : index
    %710 = arith.index_cast %709 : i32 to index
    %c0_154 = arith.constant 0 : index
    %c0_155 = arith.constant 0 : index
    %711 = vector.load %arg2[%c0_153, %710, %c0_154, %c0_155] : memref<1x8x8x64xf32, #tpu.memory_space<vmem>>, vector<1x1x8x64xf32>
    %712 = vector.shape_cast %711 : vector<1x1x8x64xf32> to vector<1x8x64xf32>
    %713 = vector.shape_cast %712 : vector<1x8x64xf32> to vector<8x64xf32>
    %714 = vector.extract_strided_slice %1 {offsets = [0, 0, 0], sizes = [1, 3, 64], strides = [1, 1, 1]} : vector<3x3x64xf32> to vector<1x3x64xf32>
    %715 = vector.shape_cast %714 : vector<1x3x64xf32> to vector<3x64xf32>
    %c1_i32_156 = arith.constant 1 : i32
    %716 = tpu.dynamic_rotate %713 by %c1_i32_156 dim 0 : vector<8x64xf32>, i32 -> vector<8x64xf32>
    %717 = vector.broadcast %8 : vector<8x1xf32> to vector<8x64xf32>
    %718 = arith.mulf %716, %717 : vector<8x64xf32>
    %c7_i32_157 = arith.constant 7 : i32
    %719 = tpu.dynamic_rotate %713 by %c7_i32_157 dim 0 : vector<8x64xf32>, i32 -> vector<8x64xf32>
    %720 = vector.broadcast %12 : vector<8x1xf32> to vector<8x64xf32>
    %721 = arith.mulf %719, %720 : vector<8x64xf32>
    %722 = vector.extract_strided_slice %715 {offsets = [0, 0], sizes = [1, 64], strides = [1, 1]} : vector<3x64xf32> to vector<1x64xf32>
    %723 = vector.shape_cast %722 : vector<1x64xf32> to vector<64xf32>
    %724 = vector.shape_cast %723 : vector<64xf32> to vector<1x64xf32>
    %725 = vector.broadcast %724 : vector<1x64xf32> to vector<8x64xf32>
    %726 = arith.mulf %718, %725 : vector<8x64xf32>
    %727 = vector.extract_strided_slice %715 {offsets = [1, 0], sizes = [1, 64], strides = [1, 1]} : vector<3x64xf32> to vector<1x64xf32>
    %728 = vector.shape_cast %727 : vector<1x64xf32> to vector<64xf32>
    %729 = vector.shape_cast %728 : vector<64xf32> to vector<1x64xf32>
    %730 = vector.broadcast %729 : vector<1x64xf32> to vector<8x64xf32>
    %731 = arith.mulf %713, %730 : vector<8x64xf32>
    %732 = arith.addf %726, %731 : vector<8x64xf32>
    %733 = vector.extract_strided_slice %715 {offsets = [2, 0], sizes = [1, 64], strides = [1, 1]} : vector<3x64xf32> to vector<1x64xf32>
    %734 = vector.shape_cast %733 : vector<1x64xf32> to vector<64xf32>
    %735 = vector.shape_cast %734 : vector<64xf32> to vector<1x64xf32>
    %736 = vector.broadcast %735 : vector<1x64xf32> to vector<8x64xf32>
    %737 = arith.mulf %721, %736 : vector<8x64xf32>
    %738 = arith.addf %732, %737 : vector<8x64xf32>
    %739 = vector.shape_cast %3 : vector<64xf32> to vector<1x64xf32>
    %740 = vector.broadcast %739 : vector<1x64xf32> to vector<8x64xf32>
    %741 = arith.addf %740, %738 : vector<8x64xf32>
    %c0_158 = arith.constant 0 : index
    %742 = arith.index_cast %708 : i32 to index
    %c0_159 = arith.constant 0 : index
    %c0_160 = arith.constant 0 : index
    %743 = vector.load %arg2[%c0_158, %742, %c0_159, %c0_160] : memref<1x8x8x64xf32, #tpu.memory_space<vmem>>, vector<1x1x8x64xf32>
    %744 = vector.shape_cast %743 : vector<1x1x8x64xf32> to vector<1x8x64xf32>
    %745 = vector.shape_cast %744 : vector<1x8x64xf32> to vector<8x64xf32>
    %746 = vector.extract_strided_slice %1 {offsets = [1, 0, 0], sizes = [1, 3, 64], strides = [1, 1, 1]} : vector<3x3x64xf32> to vector<1x3x64xf32>
    %747 = vector.shape_cast %746 : vector<1x3x64xf32> to vector<3x64xf32>
    %c1_i32_161 = arith.constant 1 : i32
    %748 = tpu.dynamic_rotate %745 by %c1_i32_161 dim 0 : vector<8x64xf32>, i32 -> vector<8x64xf32>
    %749 = vector.broadcast %8 : vector<8x1xf32> to vector<8x64xf32>
    %750 = arith.mulf %748, %749 : vector<8x64xf32>
    %c7_i32_162 = arith.constant 7 : i32
    %751 = tpu.dynamic_rotate %745 by %c7_i32_162 dim 0 : vector<8x64xf32>, i32 -> vector<8x64xf32>
    %752 = vector.broadcast %12 : vector<8x1xf32> to vector<8x64xf32>
    %753 = arith.mulf %751, %752 : vector<8x64xf32>
    %754 = vector.extract_strided_slice %747 {offsets = [0, 0], sizes = [1, 64], strides = [1, 1]} : vector<3x64xf32> to vector<1x64xf32>
    %755 = vector.shape_cast %754 : vector<1x64xf32> to vector<64xf32>
    %756 = vector.shape_cast %755 : vector<64xf32> to vector<1x64xf32>
    %757 = vector.broadcast %756 : vector<1x64xf32> to vector<8x64xf32>
    %758 = arith.mulf %750, %757 : vector<8x64xf32>
    %759 = vector.extract_strided_slice %747 {offsets = [1, 0], sizes = [1, 64], strides = [1, 1]} : vector<3x64xf32> to vector<1x64xf32>
    %760 = vector.shape_cast %759 : vector<1x64xf32> to vector<64xf32>
    %761 = vector.shape_cast %760 : vector<64xf32> to vector<1x64xf32>
    %762 = vector.broadcast %761 : vector<1x64xf32> to vector<8x64xf32>
    %763 = arith.mulf %745, %762 : vector<8x64xf32>
    %764 = arith.addf %758, %763 : vector<8x64xf32>
    %765 = vector.extract_strided_slice %747 {offsets = [2, 0], sizes = [1, 64], strides = [1, 1]} : vector<3x64xf32> to vector<1x64xf32>
    %766 = vector.shape_cast %765 : vector<1x64xf32> to vector<64xf32>
    %767 = vector.shape_cast %766 : vector<64xf32> to vector<1x64xf32>
    %768 = vector.broadcast %767 : vector<1x64xf32> to vector<8x64xf32>
    %769 = arith.mulf %753, %768 : vector<8x64xf32>
    %770 = arith.addf %764, %769 : vector<8x64xf32>
    %771 = arith.addf %741, %770 : vector<8x64xf32>
    %c1_i32_163 = arith.constant 1 : i32
    %772 = arith.addi %708, %c1_i32_163 : i32
    %c0_i32_164 = arith.constant 0 : i32
    %c7_i32_165 = arith.constant 7 : i32
    %773 = arith.maxsi %c0_i32_164, %772 : i32
    %774 = arith.minsi %c7_i32_165, %773 : i32
    %c0_166 = arith.constant 0 : index
    %775 = arith.index_cast %774 : i32 to index
    %c0_167 = arith.constant 0 : index
    %c0_168 = arith.constant 0 : index
    %776 = vector.load %arg2[%c0_166, %775, %c0_167, %c0_168] : memref<1x8x8x64xf32, #tpu.memory_space<vmem>>, vector<1x1x8x64xf32>
    %777 = vector.shape_cast %776 : vector<1x1x8x64xf32> to vector<1x8x64xf32>
    %778 = vector.shape_cast %777 : vector<1x8x64xf32> to vector<8x64xf32>
    %c0_i32_169 = arith.constant 0 : i32
    %779 = arith.cmpi sge, %772, %c0_i32_169 : i32
    %c8_i32_170 = arith.constant 8 : i32
    %780 = arith.cmpi slt, %772, %c8_i32_170 : i32
    %781 = arith.andi %779, %780 : i1
    %782 = arith.extui %781 : i1 to i32
    %783 = arith.sitofp %782 : i32 to f32
    %784 = vector.broadcast %783 : f32 to vector<8x64xf32>
    %785 = arith.mulf %778, %784 : vector<8x64xf32>
    %786 = vector.extract_strided_slice %1 {offsets = [2, 0, 0], sizes = [1, 3, 64], strides = [1, 1, 1]} : vector<3x3x64xf32> to vector<1x3x64xf32>
    %787 = vector.shape_cast %786 : vector<1x3x64xf32> to vector<3x64xf32>
    %c1_i32_171 = arith.constant 1 : i32
    %788 = tpu.dynamic_rotate %785 by %c1_i32_171 dim 0 : vector<8x64xf32>, i32 -> vector<8x64xf32>
    %789 = vector.broadcast %8 : vector<8x1xf32> to vector<8x64xf32>
    %790 = arith.mulf %788, %789 : vector<8x64xf32>
    %c7_i32_172 = arith.constant 7 : i32
    %791 = tpu.dynamic_rotate %785 by %c7_i32_172 dim 0 : vector<8x64xf32>, i32 -> vector<8x64xf32>
    %792 = vector.broadcast %12 : vector<8x1xf32> to vector<8x64xf32>
    %793 = arith.mulf %791, %792 : vector<8x64xf32>
    %794 = vector.extract_strided_slice %787 {offsets = [0, 0], sizes = [1, 64], strides = [1, 1]} : vector<3x64xf32> to vector<1x64xf32>
    %795 = vector.shape_cast %794 : vector<1x64xf32> to vector<64xf32>
    %796 = vector.shape_cast %795 : vector<64xf32> to vector<1x64xf32>
    %797 = vector.broadcast %796 : vector<1x64xf32> to vector<8x64xf32>
    %798 = arith.mulf %790, %797 : vector<8x64xf32>
    %799 = vector.extract_strided_slice %787 {offsets = [1, 0], sizes = [1, 64], strides = [1, 1]} : vector<3x64xf32> to vector<1x64xf32>
    %800 = vector.shape_cast %799 : vector<1x64xf32> to vector<64xf32>
    %801 = vector.shape_cast %800 : vector<64xf32> to vector<1x64xf32>
    %802 = vector.broadcast %801 : vector<1x64xf32> to vector<8x64xf32>
    %803 = arith.mulf %785, %802 : vector<8x64xf32>
    %804 = arith.addf %798, %803 : vector<8x64xf32>
    %805 = vector.extract_strided_slice %787 {offsets = [2, 0], sizes = [1, 64], strides = [1, 1]} : vector<3x64xf32> to vector<1x64xf32>
    %806 = vector.shape_cast %805 : vector<1x64xf32> to vector<64xf32>
    %807 = vector.shape_cast %806 : vector<64xf32> to vector<1x64xf32>
    %808 = vector.broadcast %807 : vector<1x64xf32> to vector<8x64xf32>
    %809 = arith.mulf %793, %808 : vector<8x64xf32>
    %810 = arith.addf %804, %809 : vector<8x64xf32>
    %811 = arith.addf %771, %810 : vector<8x64xf32>
    %c0_173 = arith.constant 0 : index
    %c7 = arith.constant 7 : index
    %c0_174 = arith.constant 0 : index
    %c0_175 = arith.constant 0 : index
    %812 = vector.load %arg5[%c0_173, %c7, %c0_174, %c0_175] : memref<1x8x8x64xf32, #tpu.memory_space<vmem>>, vector<1x1x8x64xf32>
    %813 = vector.shape_cast %812 : vector<1x1x8x64xf32> to vector<8x64xf32>
    %814 = vector.shape_cast %811 : vector<8x64xf32> to vector<1x1x8x64xf32>
    tpu.vector_store %arg5[%c0_173, %c7, %c0_174, %c0_175], %814 {strides = array<i32>} : memref<1x8x8x64xf32, #tpu.memory_space<vmem>>, vector<1x1x8x64xf32>,
    return
  }
  func.func @transform_0(%arg0: i32, %arg1: i32) -> (i32, i32, i32, i32) {
    %c0_i32 = arith.constant 0 : i32
    %c0_i32_0 = arith.constant 0 : i32
    %c0_i32_1 = arith.constant 0 : i32
    %c0_i32_2 = arith.constant 0 : i32
    return %arg0, %c0_i32, %c0_i32_0, %c0_i32_1 : i32, i32, i32, i32
  }
  func.func @transform_1(%arg0: i32, %arg1: i32) -> (i32, i32, i32) {
    %c0_i32 = arith.constant 0 : i32
    %c0_i32_0 = arith.constant 0 : i32
    %c0_i32_1 = arith.constant 0 : i32
    %c0_i32_2 = arith.constant 0 : i32
    return %c0_i32, %c0_i32_0, %c0_i32_1 : i32, i32, i32
  }
  func.func @transform_2(%arg0: i32, %arg1: i32) -> (i32, i32, i32) {
    %c0_i32 = arith.constant 0 : i32
    %c0_i32_0 = arith.constant 0 : i32
    %c0_i32_1 = arith.constant 0 : i32
    %c0_i32_2 = arith.constant 0 : i32
    return %c0_i32, %c0_i32_0, %c0_i32_1 : i32, i32, i32
  }
  func.func @transform_3(%arg0: i32, %arg1: i32) -> (i32, i32, i32, i32) {
    %c0_i32 = arith.constant 0 : i32
    %c0_i32_0 = arith.constant 0 : i32
    %c0_i32_1 = arith.constant 0 : i32
    return %arg0, %arg1, %c0_i32, %c0_i32_0 : i32, i32, i32, i32
  }
}

</mosaic_0001>

<bundles_post_ra>
// kernel: tpu_custom_call.1
= control target key start
LH: loop header
LB: loop body
LE: loop exit
PB: predicated region body
PF: predicated region fallthrough
CT: control target
= control target key end

     0   :  { %8 = vsyncpa [#allocation3], 0  ;;  %s1436_s0 = inlined_call_operand.hbm [shape: f32[2,8,8,64], index: 0, kind: input, shape index: {}]   ;;  %s1437_s1 = inlined_call_operand.hbm [shape: f32[3,3,64], index: 1, kind: input, shape index: {}]   ;;  %s1438_s2 = inlined_call_operand.vmem [shape: f32[1,1,64], index: 2, kind: input, shape index: {}]   ;;  %s1439_s3 = inlined_call_operand.hbm [shape: f32[2,8,8,64], index: 3, kind: output, shape index: {}]  }
   0x1   :  { %10 = vsyncpa [#allocation3 + $0x1], 0 }
   0x2   :  { %11 = vsyncpa [#allocation6], 0 }
   0x3   :  { %12 = vsyncpa [#allocation4], 0 }
   0x4   :  { %14 = vsyncpa [#allocation4 + $0x1], 0  ;;  %s1057_s12 = smov 0   ;;  %s1059_s13 = smov 0  }
   0x5   :  { %s1061_s14 = smov 0   ;;  %s1063_s15 = smov 0  }
   0x6   :  { %s1065_s16 = smov 0   ;;  %s1067_s17 = smov 0  }
   0x7 LB: > { %s751_s18 = sadd.s32 4294967295, %s1025_s17   ;;  %s752_s19 = sadd.s32 4294967294, %s1025_s17   ;;  %s1025_s17 = sphi %s1067_s17, %s20_s17   ;;  %s1021_s16 = sphi %s1065_s16, %s1463_s16   ;;  %s1017_s15 = sphi %s1063_s15, %s1462_s15   ;;  %s1013_s14 = sphi %s1061_s14, %s1461_s14   ;;  %s1009_s13 = sphi %s1059_s13, %s1460_s13   ;;  %s1005_s12 = sphi %s1057_s12, %s1459_s12  }
   0x8   : > { %p52_p0 = scmp.ne.s32.totalorder %s1009_s13, %s1005_s12  ;;  %p1091_p1 = scmp.eq.s32.totalorder %s751_s18, 0 }
   0x9   : > { %p1095_p2 = scmp.eq.s32.totalorder %s751_s18, 1  ;;  %p126_p3 = scmp.eq.s32.totalorder %s752_s19, 1 }
   0xa   : > { %s1444_s20 = scalar_select %p1091_p1, 1, 0 }
   0xb   : > { %s1445_s21 = scalar_select %p1095_p2, 1, 0 }
   0xc   : > { %p1101_p4 = por %p1091_p1, %p52_p0  ;;  %p753_p5 = scmp.ge.s32.totalorder %s1025_s17, 1 }
   0xd   : > { %p1106_p6 = por %p126_p3, %p52_p0  ;;  %p133_p7 = scmp.lt.s32.totalorder %s1025_s17, 3 }
   0xe   : > { %s1446_s22 = scalar_select %p1101_p4, 1, 0 }
   0xf   : > { %s1447_s23 = scalar_select %p1106_p6, 1, 0 }
  0x10   : > { %p1111_p8 = pnand %p753_p5, %p133_p7  ;;  %s1027_s25 = smov [#allocation5]  }
  0x11   : > { %s145_s26 = sshll.u32 %s1027_s25, 4  ;;  %s32_s28 = sadd.s32 1, %s1021_s16  ;;  %s146_s26 = int_to_ptr.vmem [resolvable:$true] %s145_s26 }
  0x12   : > { %s1448_s24 = scalar_select %p1111_p8, 1, 0 }
  0x13   : > { %p809_p9 = pneg %p1111_p8  ;;  %s881_s4 = scalar_lea.hbm %s1437_s1, 192 }
  0x14   : > { %p882_p12 = scmp.ne.s32.totalorder %s1437_s1, %s881_s4  ;;  %p888_p5 = scmp.lt.u32.totalorder %s881_s4, %s1437_s1 }
  0x15   : > { %p1120_p11 = pnand %p809_p9, %p1091_p1 }
  0x17   : > { %p883_p13 = pneg %p1120_p11 }
  0x19   : > { %p884_p0 = pnand %p883_p13, %p882_p12 }
  0x1b   : > { %p885_p3 = pneg %p884_p0 }
  0x1d   : > { %p890_p7 = pnand %p888_p5, %p885_p3 }
  0x1f   : > { %893 = shalt.err (!%p890_p7)
}
  0x20   : > { %s894_s9 = scalar_lea.vmem %s146_s26, 192  ;;  %p902_p1 = scmp.lt.s32.totalorder %s146_s26, %s146_s26 }
  0x21   : > { %p895_p9 = scmp.ne.s32.totalorder %s146_s26, %s894_s9  ;;  %p903_p4 = scmp.lt.s32.totalorder %s894_s9, %s894_s9 }
  0x23   : > { %p897_p10 = pnand %p895_p9, %p883_p13  ;;  %p904_p8 = por %p903_p4, %p902_p1 }
  0x25   : > { %p898_p6 = pneg %p897_p10 }
  0x27   : > { %p905_p2 = pnand %p904_p8, %p898_p6 }
  0x29   : > { %908 = shalt.err (!%p905_p2)
}
  0x2a   : > { %s1028_s10 = smov 64   ;;  %s1029_s11 = smov 4  }
  0x2b   : > { %812 = dma.hbm_to_vmem [thread:$0]  (!%p1120_p11), %s1437_s1, 192, %s146_s26, [#allocation6], %s1028_s10, %s1028_s10, %s1029_s11  }
  0x2c   : > { %p34_p1 = scmp.ge.s32.totalorder %s32_s28, 2  ;;  %s39_s25 = sadd.s32 1, %s1013_s14 }
  0x2d   : > { %p46_p2 = scmp.ne.s32.totalorder %s1013_s14, %s1009_s13  ;;  %p47_p4 = scmp.eq.s32.totalorder %s1025_s17, 0 }
  0x2e   : > { %s1465_s28 = smov (%p34_p1, %s32_s28), 0  ;;  %p1451_p8 = scmp.ne.s32.totalorder %s1445_s21, 0 }
  0x2f   : > { %p1147_p6 = por %p47_p4, %p46_p2  ;;  %s36_s27 = ssub.s32 %s1021_s16, %s1465_s28 }
  0x30   : > { %p1153_p10 = por %p1451_p8, %p46_p2  ;;  %p822_p12 = scmp.lt.s32.totalorder %s1025_s17, 2 }
  0x31   : > { %p37_p11 = scmp.eq.s32.totalorder %s36_s27, 0  ;;  %s162_s26 = sand.u32 1, %s1013_s14  }
  0x32   : > { %s756_s4 = sshll.u32 %s162_s26, 6  ;;  %s799_s6 = sshll.u32 %s1021_s16, 10 }
  0x33   : > { %s1162_s5 = scalar_select %p37_p11, %s1013_s14, %s39_s25  }
  0x34   : > { %s1168_s9 = scalar_lea.hbm %s1436_s0, %s799_s6  ;;  %s166_s21 = scalar_lea.vmem [#allocation2], %s756_s4 }
  0x35   : > { %s173_s10 = sshll.u32 %s166_s21, 4  ;;  %p1174_p13 = pnand %p822_p12, %p1147_p6  ;;  %s1170_s10 = int_to_ptr.vmem [resolvable:$true] %s173_s10 }
  0x36   : > { %s1178_s18 = scalar_lea.sflag [#allocation3], %s162_s26  ;;  %s909_s19 = scalar_lea.hbm %s1168_s9, 1024 }
  0x37   : > { %p910_p0 = scmp.ne.s32.totalorder %s1168_s9, %s909_s19  ;;  %p911_p3 = pneg %p1174_p13 }
  0x38   : > { %s914_s29 = scalar_lea.hbm %s1436_s0, 2048  ;;  %p915_p9 = scmp.lt.u32.totalorder %s1168_s9, %s1436_s0 }
  0x39   : > { %p912_p5 = pnand %p911_p3, %p910_p0  ;;  %p916_p1 = scmp.lt.u32.totalorder %s914_s29, %s909_s19 }
  0x3a   : > { %p918_p4 = scmp.lt.u32.totalorder %s909_s19, %s1168_s9 }
  0x3b   : > { %p913_p7 = pneg %p912_p5  ;;  %p917_p2 = por %p916_p1, %p915_p9 }
  0x3d   : > { %p919_p6 = por %p918_p4, %p917_p2 }
  0x3f   : > { %p920_p8 = pnand %p919_p6, %p913_p7 }
  0x41   : > { %923 = shalt.err (!%p920_p8)
}
  0x42   : > { %s924_s26 = scalar_lea.vmem %s1170_s10, 1024  ;;  %s1030_s7 = smov [#allocation2]  }
  0x43   : > { %p925_p12 = scmp.ne.s32.totalorder %s1170_s10, %s924_s26  ;;  %s929_s8 = sshll.u32 %s1030_s7, 4  ;;  %s930_s8 = int_to_ptr.vmem [resolvable:$false] %s929_s8 }
  0x44   : > { %s931_s21 = scalar_lea.vmem %s930_s8, 2048  ;;  %p932_p5 = scmp.lt.s32.totalorder %s1170_s10, %s930_s8 }
  0x45   : > { %p927_p11 = pnand %p925_p12, %p911_p3  ;;  %p933_p9 = scmp.lt.s32.totalorder %s931_s21, %s924_s26 }
  0x47   : > { %p928_p0 = pneg %p927_p11  ;;  %p934_p1 = por %p933_p9, %p932_p5 }
  0x49   : > { %p935_p2 = pnand %p934_p1, %p928_p0 }
  0x4b   : > { %938 = shalt.err (!%p935_p2)
}
  0x4c   : > { %s1031_s19 = smov 128   ;;  %s1032_s25 = smov 8  }
  0x4d   : > { %816 = dma.hbm_to_vmem [thread:$0]  (!%p1174_p13), %s1168_s9, 1024, %s1170_s10, %s1178_s18, %s1031_s19, %s1031_s19, %s1032_s25  }
  0x4e   : > { %p1454_p3 = scmp.ne.s32.totalorder %s1448_s24, 0 }
  0x4f   : > { %s1209_s27 = sand.u32 (!%p1454_p3), 1, %s1009_s13   ;;  %p1455_p7 = scmp.ne.s32.totalorder (!%p1454_p3), %s1446_s22, 0 }
  0x50   : > { %185 = sbr.rel (%p1454_p3) target bundleno = 168 (0xa8), region = 32  ;;  %s760_s29 = sshll.u32 (!%p1454_p3), %s1209_s27, 6 }
  0x51   : > { %s188_s4 = scalar_lea.sflag (!%p1454_p3), [#allocation3], %s1209_s27  ;;  %s1215_s6 = scalar_lea.vmem (!%p1454_p3), [#allocation2], %s760_s29 }
  0x57   : > { %992 = dma.done.wait (%p1455_p7), %s188_s4, 1024  }
  0x58   : > { %994 = vsyncadd (%p1455_p7), %s188_s4, 4294966272  ;;  %p1456_p13 = scmp.ne.s32.totalorder %s1444_s20, 0 }
  0x5a   : > { %996 = dma.done.wait (%p1456_p13), [#allocation6], 192  }
  0x5b   : > { %998 = vsyncadd (%p1456_p13), [#allocation6], 4294967104  ;;  %v224_v0 = vlaneseq  ;;  %v1033_v5 = vmov 0.0   ;;  %v220_v8 = vld [vmem:[#allocation5] sm:$0x7]  ;;  %v766_v16 = vld [vmem:[%s1215_s6 + $0x8] sm:$0xff] }
  0x5c   : > { %v221_v9 = vld [vmem:[#allocation5 + $0x4] sm:$0x7]  ;;  %v222_v10 = vld [vmem:[#allocation5 + $0x8] sm:$0x7]  ;;  %v305_v22 = vrot.slane %v766_v16, 7  ;;  %v307_v23 = vrot.slane %v766_v16, 1 }
  0x5d   : > { %v225_v1 = vshrl.u32 %v224_v0, 7  ;;  %v239_v11 = vld [vmem:[%s1215_s6] sm:$0xff]  ;;  %v768_v45 = vld [vmem:[%s1215_s6 + $0x10] sm:$0xff]  ;;  %vm327_vm2 = vcmask 523264   ;;  %s1296_s24 = scalar_lea.vmem [#allocation7], %s760_s29  ;;  %s800_s10 = sshll.u32 %s1017_s15, 10 }
  0x5e   : > { %v247_v17 = vmul.f32 0.0, %v239_v11  ;;  %v279_v18 = vrot.slane %v239_v11, 7  ;;  %v281_v19 = vrot.slane %v239_v11, 1  ;;  %v1273_v54 = vld [vmem:[%s1438_s2] ss:$0 sm:$0xff]  ;;  %v355_v57 = vrot.slane %v768_v45, 7  ;;  %s1385_s26 = scalar_lea.hbm %s1439_s3, %s800_s10 }
  0x5f   : > { %vm226_vm0 = vcmp.gt.s32.totalorder %v225_v1, 0  ;;  %vm229_vm1 = vcmp.lt.s32.totalorder %v225_v1, 7  ;;  %v254_v2 = vsub.s32 0, %v225_v1  ;;  %v259_v3 = vsub.s32 1, %v225_v1  ;;  %s623_s9 = sshll.u32 %s1296_s24, 4  ;;  %s608_s7 = scalar_lea.sflag [#allocation4], %s1209_s27  ;;  %s1380_s9 = int_to_ptr.vmem [resolvable:$true] %s623_s9 }
  0x60   : > { %v265_v4 = vsub.s32 2, %v225_v1  ;;  %v1225_v6 = vsel %vm226_vm0, 1.0, %v1033_v5  ;;  %v1227_v7 = vsel %vm229_vm1, 1.0, %v1033_v5  ;;  %v248_v25 = vrot.slane %v247_v17, 7  ;;  %s939_s8 = scalar_lea.vmem %s1380_s9, 1024  ;;  %s1034_s15 = smov [#allocation7]  }
  0x61   : > { %v1230_v12 = vrot.slane %v220_v8, %v254_v2  ;;  %v1232_v13 = vrot.slane %v220_v8, %v259_v3  ;;  %v1236_v15 = vrot.slane %v221_v9, %v254_v2  ;;  %v1239_v20 = vrot.slane %v221_v9, %v259_v3  ;;  %p940_p4 = scmp.ne.s32.totalorder %s1380_s9, %s939_s8  ;;  %s943_s21 = sshll.u32 %s1034_s15, 4  ;;  %s944_s21 = int_to_ptr.vmem [resolvable:$false] %s943_s21 }
  0x62   : > { %v1234_v14 = vrot.slane %v220_v8, %v265_v4  ;;  %v1241_v21 = vrot.slane %v221_v9, %v265_v4  ;;  %v1243_v24 = vrot.slane %v222_v10, %v254_v2  ;;  %v250_v26 = vrot.slane %v247_v17, 1  ;;  %v772_v9 = vld [vmem:[%s1215_s6 + $0x18] sm:$0xff]  ;;  %s945_s19 = scalar_lea.vmem %s944_s21, 2048  ;;  %p946_p12 = scmp.lt.s32.totalorder %s1380_s9, %s944_s21 }
  0x63   : > { %v261_v27 = vmul.f32 %v1232_v13, %v247_v17  ;;  %v280_v28 = vmul.f32 %v1225_v6, %v279_v18  ;;  %v282_v29 = vmul.f32 %v1227_v7, %v281_v19  ;;  %v292_v30 = vmul.f32 %v1239_v20, %v239_v11  ;;  %p941_p6 = pnand %p940_p4, %p1153_p10  ;;  %p947_p11 = scmp.lt.s32.totalorder %s945_s19, %s939_s8 }
  0x64   : > { %v306_v31 = vmul.f32 %v1225_v6, %v305_v22  ;;  %v308_v32 = vmul.f32 %v1227_v7, %v307_v23  ;;  %v249_v33 = vmul.f32 %v1225_v6, %v248_v25  ;;  %v251_v34 = vmul.f32 %v1227_v7, %v250_v26 }
  0x65   : > { %v287_v35 = vmul.f32 %v1236_v15, %v280_v28  ;;  %v1254_v36 = vrot.slane %v222_v10, %v259_v3  ;;  %v298_v37 = vmul.f32 %v1241_v21, %v282_v29  ;;  %v1258_v39 = vrot.slane %v222_v10, %v265_v4  ;;  %p942_p8 = pneg %p941_p6  ;;  %p948_p0 = por %p947_p11, %p946_p12 }
  0x66   : > { %v313_v38 = vmul.f32 %v1243_v24, %v306_v31  ;;  %v334_v40 = vmul.f32 %v280_v28, %v1230_v12  ;;  %v256_v41 = vmul.f32 %v1230_v12, %v249_v33  ;;  %v267_v42 = vmul.f32 %v1234_v14, %v251_v34 }
  0x67   : > { %v293_v43 = vadd.f32 %v292_v30, %v287_v35  ;;  %v318_v44 = vmul.f32 %v766_v16, %v1254_v36  ;;  %v324_v46 = vmul.f32 %v1258_v39, %v308_v32  ;;  %v335_v47 = vmul.f32 %v1232_v13, %v239_v11  ;;  %p949_p5 = pnand %p948_p0, %p942_p8 }
  0x68   : > { %v337_v48 = vmul.f32 %v282_v29, %v1234_v14  ;;  %v345_v49 = vmul.f32 %v306_v31, %v1236_v15  ;;  %v262_v50 = vadd.f32 %v261_v27, %v256_v41  ;;  %v346_v53 = vmul.f32 %v766_v16, %v1239_v20 }
  0x69   : > { %v299_v51 = vadd.f32 %v298_v37, %v293_v43  ;;  %v319_v52 = vadd.f32 %v318_v44, %v313_v38  ;;  %v336_v55 = vadd.f32 %v335_v47, %v334_v40  ;;  %v348_v56 = vmul.f32 %v308_v32, %v1241_v21  ;;  %v776_v43 = vld [vmem:[%s1215_s6 + $0x20] sm:$0xff] }
  0x6a   : > { %v357_v58 = vrot.slane %v768_v45, 1  ;;  %v268_v59 = vadd.f32 %v267_v42, %v262_v50  ;;  %v347_v61 = vadd.f32 %v346_v53, %v345_v49  ;;  %v360_v62 = vmul.f32 %v768_v45, %v1254_v36 }
  0x6b   : > { %v325_v60 = vadd.f32 %v324_v46, %v319_v52  ;;  %v338_v63 = vadd.f32 %v337_v48, %v336_v55  ;;  %v356_v0 = vmul.f32 %v1225_v6, %v355_v57  ;;  %v372_v2 = vmul.f32 %v306_v31, %v1230_v12 }
  0x6c   : > { %v358_v1 = vmul.f32 %v1227_v7, %v357_v58  ;;  %v275_v3 = vadd.f32 %v1273_v54, %v268_v59  ;;  %v349_v4 = vadd.f32 %v348_v56, %v347_v61  ;;  %v373_v5 = vmul.f32 %v766_v16, %v1232_v13 }
  0x6d   : > { %v375_v8 = vmul.f32 %v308_v32, %v1234_v14  ;;  %v339_v10 = vadd.f32 %v1273_v54, %v338_v63  ;;  %v359_v11 = vmul.f32 %v356_v0, %v1243_v24  ;;  %v383_v18 = vmul.f32 %v356_v0, %v1236_v15 }
  0x6e   : > { %v362_v17 = vmul.f32 %v358_v1, %v1258_v39  ;;  %v300_v19 = vadd.f32 %v299_v51, %v275_v3  ;;  %v374_v22 = vadd.f32 %v373_v5, %v372_v2  ;;  %v384_v23 = vmul.f32 %v768_v45, %v1239_v20 }
  0x6f   : > { %v386_v25 = vmul.f32 %v358_v1, %v1241_v21  ;;  %v350_v26 = vadd.f32 %v349_v4, %v339_v10  ;;  %v361_v16 = vadd.f32 %v360_v62, %v359_v11  ;;  %v393_v27 = vrot.slane %v772_v9, 7 }
  0x70   : > { %v395_v28 = vrot.slane %v772_v9, 1  ;;  %v326_v29 = vadd.f32 %v325_v60, %v300_v19  ;;  %v376_v30 = vadd.f32 %v375_v8, %v374_v22  ;;  %v385_v31 = vadd.f32 %v384_v23, %v383_v18 }
  0x71   : > { %v398_v32 = vmul.f32 %v772_v9, %v1254_v36  ;;  %v363_v33 = vadd.f32 %v362_v17, %v361_v16  ;;  %v394_v34 = vmul.f32 %v1225_v6, %v393_v27  ;;  %v410_v37 = vmul.f32 %v356_v0, %v1230_v12 }
  0x72   : > { %v396_v35 = vmul.f32 %v1227_v7, %v395_v28  ;;  %328 = vst.msk [vmem:[%s1296_s24] sm:$0xff] %vm327_vm2, %v326_v29  ;;  %v377_v38 = vadd.f32 %v1273_v54, %v376_v30  ;;  %v387_v40 = vadd.f32 %v386_v25, %v385_v31  ;;  %v411_v41 = vmul.f32 %v768_v45, %v1232_v13 }
  0x73   : > { %v413_v42 = vmul.f32 %v358_v1, %v1234_v14  ;;  %v364_v44 = vadd.f32 %v363_v33, %v350_v26  ;;  %v397_v46 = vmul.f32 %v394_v34, %v1243_v24  ;;  %v421_v48 = vmul.f32 %v394_v34, %v1236_v15  ;;  %v780_v1 = vld [vmem:[%s1215_s6 + $0x28] sm:$0xff] }
  0x74   : > { %v400_v47 = vmul.f32 %v396_v35, %v1258_v39  ;;  %v388_v49 = vadd.f32 %v387_v40, %v377_v38  ;;  %v412_v50 = vadd.f32 %v411_v41, %v410_v37  ;;  %v422_v51 = vmul.f32 %v772_v9, %v1239_v20 }
  0x75   : > { %v424_v52 = vmul.f32 %v396_v35, %v1241_v21  ;;  %769 = vst.msk [vmem:[%s1296_s24 + $0x8] sm:$0xff] %vm327_vm2, %v364_v44  ;;  %v399_v45 = vadd.f32 %v398_v32, %v397_v46  ;;  %v431_v53 = vrot.slane %v776_v43, 7  ;;  %v433_v55 = vrot.slane %v776_v43, 1 }
  0x76   : > { %v436_v56 = vmul.f32 %v776_v43, %v1254_v36  ;;  %v414_v57 = vadd.f32 %v413_v42, %v412_v50  ;;  %v423_v58 = vadd.f32 %v422_v51, %v421_v48  ;;  %v448_v59 = vmul.f32 %v394_v34, %v1230_v12 }
  0x77   : > { %v449_v60 = vmul.f32 %v772_v9, %v1232_v13  ;;  %v401_v61 = vadd.f32 %v400_v47, %v399_v45  ;;  %v432_v62 = vmul.f32 %v1225_v6, %v431_v53  ;;  %v434_v63 = vmul.f32 %v1227_v7, %v433_v55 }
  0x78   : > { %v451_v0 = vmul.f32 %v396_v35, %v1234_v14  ;;  %v415_v2 = vadd.f32 %v1273_v54, %v414_v57  ;;  %v425_v3 = vadd.f32 %v424_v52, %v423_v58  ;;  %v460_v5 = vmul.f32 %v776_v43, %v1239_v20  ;;  %v784_v35 = vld [vmem:[%s1215_s6 + $0x30] sm:$0xff] }
  0x79   : > { %v450_v4 = vadd.f32 %v449_v60, %v448_v59  ;;  %v402_v8 = vadd.f32 %v401_v61, %v388_v49  ;;  %v435_v10 = vmul.f32 %v432_v62, %v1243_v24  ;;  %v438_v9 = vmul.f32 %v434_v63, %v1258_v39  ;;  %v788_v59 = vld [vmem:[%s1215_s6 + $0x38] sm:$0xff] }
  0x7a   : > { %v459_v11 = vmul.f32 %v432_v62, %v1236_v15  ;;  %v426_v17 = vadd.f32 %v425_v3, %v415_v2  ;;  %v462_v19 = vmul.f32 %v434_v63, %v1241_v21  ;;  %v469_v22 = vrot.slane %v780_v1, 7 }
  0x7b   : > { %v452_v18 = vadd.f32 %v451_v0, %v450_v4  ;;  %773 = vst.msk [vmem:[%s1296_s24 + $0x10] sm:$0xff] %vm327_vm2, %v402_v8  ;;  %v437_v23 = vadd.f32 %v436_v56, %v435_v10  ;;  %v471_v26 = vrot.slane %v780_v1, 1  ;;  %v474_v16 = vmul.f32 %v780_v1, %v1254_v36 }
  0x7c   : > { %v461_v25 = vadd.f32 %v460_v5, %v459_v11  ;;  %v470_v28 = vmul.f32 %v1225_v6, %v469_v22  ;;  %v486_v29 = vmul.f32 %v432_v62, %v1230_v12  ;;  %v487_v30 = vmul.f32 %v776_v43, %v1232_v13 }
  0x7d   : > { %v453_v27 = vadd.f32 %v1273_v54, %v452_v18  ;;  %v439_v31 = vadd.f32 %v438_v9, %v437_v23  ;;  %v472_v33 = vmul.f32 %v1227_v7, %v471_v26  ;;  %v489_v34 = vmul.f32 %v434_v63, %v1234_v14 }
  0x7e   : > { %v463_v32 = vadd.f32 %v462_v19, %v461_v25  ;;  %v473_v37 = vmul.f32 %v470_v28, %v1243_v24  ;;  %v488_v38 = vadd.f32 %v487_v30, %v486_v29  ;;  %v497_v40 = vmul.f32 %v470_v28, %v1236_v15 }
  0x7f   : > { %v498_v41 = vmul.f32 %v780_v1, %v1239_v20  ;;  %v440_v42 = vadd.f32 %v439_v31, %v426_v17  ;;  %v476_v43 = vmul.f32 %v472_v33, %v1258_v39  ;;  %v500_v46 = vmul.f32 %v472_v33, %v1241_v21 }
  0x80   : > { %v464_v44 = vadd.f32 %v463_v32, %v453_v27  ;;  %v475_v47 = vadd.f32 %v474_v16, %v473_v37  ;;  %v490_v48 = vadd.f32 %v489_v34, %v488_v38  ;;  %v507_v50 = vrot.slane %v784_v35, 7 }
  0x81   : > { %v499_v49 = vadd.f32 %v498_v41, %v497_v40  ;;  %777 = vst.msk [vmem:[%s1296_s24 + $0x18] sm:$0xff] %vm327_vm2, %v440_v42  ;;  %v509_v51 = vrot.slane %v784_v35, 1  ;;  %v512_v52 = vmul.f32 %v784_v35, %v1254_v36  ;;  %v524_v45 = vmul.f32 %v470_v28, %v1230_v12 }
  0x82   : > { %v525_v53 = vmul.f32 %v780_v1, %v1232_v13  ;;  %v477_v55 = vadd.f32 %v476_v43, %v475_v47  ;;  %v491_v56 = vadd.f32 %v1273_v54, %v490_v48  ;;  %v508_v58 = vmul.f32 %v1225_v6, %v507_v50 }
  0x83   : > { %v501_v57 = vadd.f32 %v500_v46, %v499_v49  ;;  %v510_v60 = vmul.f32 %v1227_v7, %v509_v51  ;;  %v527_v62 = vmul.f32 %v472_v33, %v1234_v14  ;;  %v536_v63 = vmul.f32 %v784_v35, %v1239_v20 }
  0x84   : > { %v526_v61 = vadd.f32 %v525_v53, %v524_v45  ;;  %v478_v0 = vadd.f32 %v477_v55, %v464_v44  ;;  %v511_v3 = vmul.f32 %v508_v58, %v1243_v24  ;;  %v535_v1 = vmul.f32 %v508_v58, %v1236_v15 }
  0x85   : > { %v502_v2 = vadd.f32 %v501_v57, %v491_v56  ;;  %v514_v4 = vmul.f32 %v510_v60, %v1258_v39  ;;  %v538_v8 = vmul.f32 %v510_v60, %v1241_v21  ;;  %v545_v10 = vrot.slane %v788_v59, 7 }
  0x86   : > { %v528_v5 = vadd.f32 %v527_v62, %v526_v61  ;;  %781 = vst.msk [vmem:[%s1296_s24 + $0x20] sm:$0xff] %vm327_vm2, %v478_v0  ;;  %v513_v9 = vadd.f32 %v512_v52, %v511_v3  ;;  %v537_v11 = vadd.f32 %v536_v63, %v535_v1  ;;  %v547_v17 = vrot.slane %v788_v59, 1 }
  0x87   : > { %v550_v18 = vmul.f32 %v788_v59, %v1254_v36  ;;  %v546_v22 = vmul.f32 %v1225_v6, %v545_v10  ;;  %v562_v23 = vmul.f32 %v508_v58, %v1230_v12  ;;  %v563_v25 = vmul.f32 %v784_v35, %v1232_v13 }
  0x88   : > { %v529_v19 = vadd.f32 %v1273_v54, %v528_v5  ;;  %v515_v26 = vadd.f32 %v514_v4, %v513_v9  ;;  %v539_v16 = vadd.f32 %v538_v8, %v537_v11  ;;  %v548_v27 = vmul.f32 %v1227_v7, %v547_v17 }
  0x89   : > { %v565_v28 = vmul.f32 %v510_v60, %v1234_v14  ;;  %v549_v29 = vmul.f32 %v546_v22, %v1243_v24  ;;  %v564_v30 = vadd.f32 %v563_v25, %v562_v23  ;;  %v573_v31 = vmul.f32 %v546_v22, %v1236_v15 }
  0x8a   : > { %v574_v32 = vmul.f32 %v788_v59, %v1239_v20  ;;  %v516_v33 = vadd.f32 %v515_v26, %v502_v2  ;;  %v540_v34 = vadd.f32 %v539_v16, %v529_v19  ;;  %v552_v12 = vmul.f32 %v548_v27, %v1258_v39 }
  0x8b   : > { %v576_v13 = vmul.f32 %v548_v27, %v1241_v21  ;;  %v551_v35 = vadd.f32 %v550_v18, %v549_v29  ;;  %v566_v37 = vadd.f32 %v565_v28, %v564_v30  ;;  %v594_v40 = vmul.f32 0.0, %v788_v59 }
  0x8c   : > { %v575_v38 = vadd.f32 %v574_v32, %v573_v31  ;;  %785 = vst.msk [vmem:[%s1296_s24 + $0x28] sm:$0xff] %vm327_vm2, %v516_v33 }
  0x8d   : > { %v553_v14 = vadd.f32 %v552_v12, %v551_v35  ;;  %v595_v41 = vrot.slane %v594_v40, 7  ;;  %v567_v15 = vadd.f32 %v1273_v54, %v566_v37  ;;  %v597_v20 = vrot.slane %v594_v40, 1 }
  0x8e   : > { %v577_v44 = vadd.f32 %v576_v13, %v575_v38  ;;  %v600_v21 = vmul.f32 %v594_v40, %v1254_v36 }
  0x8f   : > { %v554_v42 = vadd.f32 %v553_v14, %v540_v34  ;;  %v596_v43 = vmul.f32 %v1225_v6, %v595_v41  ;;  %v598_v46 = vmul.f32 %v1227_v7, %v597_v20 }
  0x90   : > { %v578_v54 = vadd.f32 %v577_v44, %v567_v15 }
  0x91   : > { %789 = vst.msk [vmem:[%s1296_s24 + $0x30] sm:$0xff] %vm327_vm2, %v554_v42  ;;  %v599_v47 = vmul.f32 %v596_v43, %v1243_v24  ;;  %v602_v48 = vmul.f32 %v598_v46, %v1258_v39 }
  0x93   : > { %v601_v49 = vadd.f32 %v600_v21, %v599_v47 }
  0x95   : > { %v603_v50 = vadd.f32 %v602_v48, %v601_v49 }
  0x97   : > { %v604_v6 = vadd.f32 %v603_v50, %v578_v54 }
  0x99   : > { %793 = vst.msk [vmem:[%s1296_s24 + $0x38] sm:$0xff] %vm327_vm2, %v604_v6 }
  0x9a   : > { %952 = shalt.err (!%p949_p5)
}
  0x9b   : > { %s953_s25 = scalar_lea.hbm %s1385_s26, 1024  ;;  %s957_s6 = scalar_lea.hbm %s1439_s3, 2048 }
  0x9c   : > { %p954_p9 = scmp.ne.s32.totalorder %s1385_s26, %s953_s25  ;;  %p958_p3 = scmp.lt.u32.totalorder %s1385_s26, %s1439_s3 }
  0x9d   : > { %p959_p7 = scmp.lt.u32.totalorder %s957_s6, %s953_s25  ;;  %p961_p4 = scmp.lt.u32.totalorder %s953_s25, %s1385_s26 }
  0x9e   : > { %p955_p1 = pnand %p954_p9, %p1153_p10 }
  0x9f   : > { %p960_p13 = por %p959_p7, %p958_p3 }
  0xa0   : > { %p956_p2 = pneg %p955_p1 }
  0xa1   : > { %p962_p6 = por %p961_p4, %p960_p13 }
  0xa3   : > { %p963_p8 = pnand %p962_p6, %p956_p2 }
  0xa5   : > { %966 = shalt.err (!%p963_p8)
}
  0xa6   : > { %s1035_s24 = smov 128   ;;  %s1036_s10 = smov 8  }
  0xa7   : > { %807 = dma.vmem_to_hbm [thread:$0]  (%p1153_p10), %s1380_s9, 1024, %s1385_s26, %s608_s7, %s1035_s24, %s1035_s24, %s1036_s10  }
  0xa8 PF: > { %s638_s11 = sand.u32 1, %s1005_s12   ;;  %p1457_p12 = scmp.ne.s32.totalorder %s1447_s23, 0 }
  0xa9   : > { %p1458_p11 = scmp.ge.s32.totalorder %s1025_s17, 2  ;;  %s639_s18 = scalar_lea.sflag [#allocation4], %s638_s11 }
  0xab   : > { %p818_p0 = pnand %p1458_p11, %p1457_p12 }
  0xad   : > { %1000 = dma.done.wait (!%p818_p0), %s639_s18, 1024  }
  0xae   : > { %1002 = vsyncadd (!%p818_p0), %s639_s18, 4294966272  ;;  %s20_s17 = sadd.s32 1, %s1025_s17   ;;  %s1459_s12 = smov %s1009_s13 }
  0xaf   : > { %p17_p5 = scmp.ge.s32.totalorder %s20_s17, 4   ;;  %s1460_s13 = smov %s1013_s14 }
  0xb0   : > { %s1461_s14 = smov %s1162_s5  ;;  %s1462_s15 = smov %s1021_s16 }
  0xb1   : > { %s1463_s16 = smov %s1465_s28  ;;  %19 = sbr.rel (!%p17_p5) target bundleno = 7 (0x7), region = 98 }
  0xb8   :  { %644 = vsyncpa [#allocation3], 1 }
  0xb9   :  { %646 = vsyncpa [#allocation3 + $0x1], 1 }
  0xba   :  { %647 = vsyncpa [#allocation6], 1 }
  0xbb   :  { %648 = vsyncpa [#allocation4], 1 }
  0xbc   :  { %650 = vsyncpa [#allocation4 + $0x1], 1 }

</bundles_post_ra>
